<compile_context>
chip_gen: v7x
topology: tpu7x:2x2x1
jax: 0.10.0
libtpu: 0.0.40
codegen_flags: <defaults>
</compile_context>

<pallas_src>
import functools

import jax
import jax.numpy as jnp
from jax.experimental import pallas as pl
from jax.experimental.pallas import tpu as pltpu


# ----------------------------- Pallas kernel ------------------------------ #

def _lstm2_kernel(lens_ref, g0_ref, whh0_ref, w1_ref, b1_ref,
                  out_ref, hn_ref, cn_ref,
                  h0_ref, c0_ref, h1_ref, c1_ref,
                  *, hidden_size, t_block):
    tb = pl.program_id(0)
    H = hidden_size

    @pl.when(tb == 0)
    def _():
        h0_ref[...] = jnp.zeros_like(h0_ref)
        c0_ref[...] = jnp.zeros_like(c0_ref)
        h1_ref[...] = jnp.zeros_like(h1_ref)
        c1_ref[...] = jnp.zeros_like(c1_ref)

    lens = lens_ref[...]                 # [B, 1] int32
    whh0 = whh0_ref[...]                 # [H, 4H]   (gate order i,f,o,g)
    w1 = w1_ref[...]                     # [2H, 4H]  fused [W_ih_l1 ; W_hh_l1]
    b1 = b1_ref[...]                     # [1, 4H]

    t_base = tb * t_block

    def gate_act(gates):
        # Gate columns were reordered to (i, f, o, g) in the wrapper, so the
        # three sigmoids act on one contiguous [B, 3H] slab.
        sig = jax.nn.sigmoid(gates[:, :3 * H])
        g = jnp.tanh(gates[:, 3 * H:])
        return sig[:, :H], sig[:, H:2 * H], sig[:, 2 * H:3 * H], g

    # Carry the state in registers across the (static, fully unrolled) block.
    h0 = h0_ref[...]
    c0 = c0_ref[...]
    h1 = h1_ref[...]
    c1 = c1_ref[...]

    for tt in range(t_block):
        valid = lens > (t_base + tt)                              # [B, 1] bool

        # ---- layer 0: input projection precomputed; only h @ W_hh here ----
        gates0 = g0_ref[tt] + jnp.dot(h0, whh0,
                                      preferred_element_type=jnp.float32)
        i0, f0, o0, g0 = gate_act(gates0)
        c0n = f0 * c0 + i0 * g0
        h0n = o0 * jnp.tanh(c0n)
        h0 = jnp.where(valid, h0n, h0)
        c0 = jnp.where(valid, c0n, c0)

        # ---- layer 1: single fused matmul on concat([h0, h1]) ----
        x1 = jnp.concatenate([h0, h1], axis=-1)                   # [B, 2H]
        gates1 = jnp.dot(x1, w1, preferred_element_type=jnp.float32) + b1
        i1, f1, o1, g1 = gate_act(gates1)
        c1n = f1 * c1 + i1 * g1
        h1n = o1 * jnp.tanh(c1n)
        h1 = jnp.where(valid, h1n, h1)
        c1 = jnp.where(valid, c1n, c1)

        # pad_packed_sequence: padded positions are zero.  Stage into the
        # lane-dense (B, T_BLOCK*H) output slab (static lane slice).
        out_ref[0, :, tt * H:(tt + 1) * H] = jnp.where(valid, h1, 0.0)

    h0_ref[...] = h0
    c0_ref[...] = c0
    h1_ref[...] = h1
    c1_ref[...] = c1

    @pl.when(tb == pl.num_programs(0) - 1)
    def _():
        hn_ref[0] = h0
        hn_ref[1] = h1
        cn_ref[0] = c0
        cn_ref[1] = c1


# ------------------------------- Wrapper ----------------------------------- #

def _reorder_gates(w):
    """Reorder the 4H gate axis from PyTorch (i, f, g, o) to (i, f, o, g)."""
    i, f, g, o = jnp.split(w, 4, axis=-1)
    return jnp.concatenate([i, f, o, g], axis=-1)


def temporal_net_forward(x_btd, seq_lens, weights, hidden_size, t_block=8):
    """x_btd: [B, T, D_in] float32 (batch_first, like the PyTorch module).
    seq_lens: 1-D lengths, sorted descending (enforce_sorted=True semantics).
    weights: raw PyTorch-layout LSTM weights
        (w_ih_l0 [4H,D], w_hh_l0 [4H,H], b_ih_l0 [4H], b_hh_l0 [4H],
         w_ih_l1 [4H,H], w_hh_l1 [4H,H], b_ih_l1 [4H], b_hh_l1 [4H]).
    Returns (last_hiddens [B, Tmax, H], (h_n [2,B,H], c_n [2,B,H]))."""
    B, T, D = x_btd.shape
    H = hidden_size
    (w_ih_l0, w_hh_l0, b_ih_l0, b_hh_l0,
     w_ih_l1, w_hh_l1, b_ih_l1, b_hh_l1) = weights

    t_max = int(max(int(l) for l in seq_lens))      # pad_packed_sequence length
    n_blocks = pl.cdiv(t_max, t_block)
    t_pad = n_blocks * t_block

    # --- prepare kernel-side parameters (gate reorder, transpose, fuse) ---
    wih0T = _reorder_gates(jnp.transpose(w_ih_l0))                   # [D, 4H]
    whh0T = _reorder_gates(jnp.transpose(w_hh_l0))                   # [H, 4H]
    b0 = _reorder_gates((b_ih_l0 + b_hh_l0).reshape(1, 4 * H))       # [1, 4H]
    w1 = _reorder_gates(jnp.concatenate(
        [jnp.transpose(w_ih_l1), jnp.transpose(w_hh_l1)], axis=0))   # [2H, 4H]
    b1 = _reorder_gates((b_ih_l1 + b_hh_l1).reshape(1, 4 * H))       # [1, 4H]
    # NOTE: for v6e/v7x one could cast wih0T/whh0T/w1 to bf16 here (MXU-only);
    # kept f32 so activations/accumulation match the reference bit-for-bit-ish.

    # --- hoist the non-recurrent layer-0 input projection out of the loop ---
    x_tbd = jnp.transpose(x_btd, (1, 0, 2))[:t_max]                  # [T, B, D]
    g0 = jnp.einsum('tbd,dg->tbg', x_tbd, wih0T,
                    preferred_element_type=jnp.float32) + b0         # [T, B, 4H]
    g0 = jnp.pad(g0, ((0, t_pad - t_max), (0, 0), (0, 0)))           # [Tp, B, 4H]

    lens = jnp.asarray(seq_lens, dtype=jnp.int32).reshape(B, 1)

    kernel = functools.partial(_lstm2_kernel, hidden_size=H, t_block=t_block)

    out_shapes = (
        jax.ShapeDtypeStruct((n_blocks, B, t_block * H), jnp.float32),  # out
        jax.ShapeDtypeStruct((2, B, H), jnp.float32),                   # h_n
        jax.ShapeDtypeStruct((2, B, H), jnp.float32),                   # c_n
    )

    grid_spec = pltpu.PrefetchScalarGridSpec(
        num_scalar_prefetch=0,
        grid=(n_blocks,),
        in_specs=[
            pl.BlockSpec((B, 1), lambda tb: (0, 0)),                    # lens
            pl.BlockSpec((t_block, B, 4 * H), lambda tb: (tb, 0, 0)),   # g0 block
            pl.BlockSpec((H, 4 * H), lambda tb: (0, 0)),                # W_hh l0
            pl.BlockSpec((2 * H, 4 * H), lambda tb: (0, 0)),            # fused W l1
            pl.BlockSpec((1, 4 * H), lambda tb: (0, 0)),                # bias l1
        ],
        out_specs=[
            pl.BlockSpec((1, B, t_block * H), lambda tb: (tb, 0, 0)),   # out block
            pl.BlockSpec((2, B, H), lambda tb: (0, 0, 0)),              # h_n
            pl.BlockSpec((2, B, H), lambda tb: (0, 0, 0)),              # c_n
        ],
        scratch_shapes=[
            pltpu.VMEM((B, H), jnp.float32),   # h0
            pltpu.VMEM((B, H), jnp.float32),   # c0
            pltpu.VMEM((B, H), jnp.float32),   # h1
            pltpu.VMEM((B, H), jnp.float32),   # c1
        ],
    )

    out_blk, h_n, c_n = pl.pallas_call(
        kernel,
        out_shape=out_shapes,
        grid_spec=grid_spec,
        compiler_params=pltpu.CompilerParams(
            dimension_semantics=("arbitrary",)),   # time is inherently serial
    )(lens, g0, whh0T, w1, b1)

    # (n_blocks, B, T_BLOCK*H) -> (B, Tmax, H)
    out = out_blk.reshape(n_blocks, B, t_block, H)
    out = jnp.transpose(out, (1, 0, 2, 3)).reshape(B, t_pad, H)[:, :t_max]
    # dropout(p=0) == identity
    return out, (h_n, c_n)


# --------------------------- pure-JAX reference ----------------------------- #

def temporal_net_reference(x_btd, seq_lens, weights, hidden_size):
    B, T, D = x_btd.shape
    H = hidden_size
    (w_ih_l0, w_hh_l0, b_ih_l0, b_hh_l0,
     w_ih_l1, w_hh_l1, b_ih_l1, b_hh_l1) = weights
    lens = jnp.asarray(seq_lens, dtype=jnp.int32)
    t_max = int(max(int(l) for l in seq_lens))

    def cell(x_in, h, c, w_ih, w_hh, b_ih, b_hh):
        g = x_in @ w_ih.T + h @ w_hh.T + b_ih + b_hh        # PyTorch (i,f,g,o)
        i = jax.nn.sigmoid(g[:, :H])
        f = jax.nn.sigmoid(g[:, H:2 * H])
        gg = jnp.tanh(g[:, 2 * H:3 * H])
        o = jax.nn.sigmoid(g[:, 3 * H:])
        c_new = f * c + i * gg
        return o * jnp.tanh(c_new), c_new

    h0 = c0 = h1 = c1 = jnp.zeros((B, H), jnp.float32)
    outs = []
    for t in range(t_max):
        valid = (lens > t)[:, None]
        h0n, c0n = cell(x_btd[:, t], h0, c0, w_ih_l0, w_hh_l0, b_ih_l0, b_hh_l0)
        h0 = jnp.where(valid, h0n, h0)
        c0 = jnp.where(valid, c0n, c0)
        h1n, c1n = cell(h0, h1, c1, w_ih_l1, w_hh_l1, b_ih_l1, b_hh_l1)
        h1 = jnp.where(valid, h1n, h1)
        c1 = jnp.where(valid, c1n, c1)
        outs.append(jnp.where(valid, h1, 0.0))
    out = jnp.stack(outs, axis=1)
    return out, (jnp.stack([h0, h1]), jnp.stack([c0, c1]))


# --------------------------------- main ------------------------------------ #

if __name__ == "__main__":
    B, T, D_IN, H = 8, 6, 8, 32   # 4H = 128 -> one lane-dense gate tile

    key = jax.random.PRNGKey(0)
    k_x, k0a, k0b, k0c, k0d, k1a, k1b, k1c, k1d = jax.random.split(key, 9)

    x = jax.random.normal(k_x, (B, T, D_IN), dtype=jnp.float32)
    seq_lens = [6, 5, 4, 3, 3, 2, 2, 1]   # sorted descending (enforce_sorted=True)

    # PyTorch LSTM init: U(-1/sqrt(H), 1/sqrt(H)); gate order i, f, g, o.
    k = 1.0 / jnp.sqrt(jnp.float32(H))
    u = lambda kk, shp: jax.random.uniform(kk, shp, jnp.float32, -k, k)
    weights = (
        u(k0a, (4 * H, D_IN)), u(k0b, (4 * H, H)), u(k0c, (4 * H,)), u(k0d, (4 * H,)),
        u(k1a, (4 * H, H)),    u(k1b, (4 * H, H)), u(k1c, (4 * H,)), u(k1d, (4 * H,)),
    )

    out, (h_n, c_n) = temporal_net_forward(x, seq_lens, weights, H, t_block=8)
    jax.block_until_ready((out, h_n, c_n))

    ref_out, (ref_hn, ref_cn) = temporal_net_reference(x, seq_lens, weights, H)
    assert out.shape == (B, max(seq_lens), H)
    assert h_n.shape == (2, B, H) and c_n.shape == (2, B, H)
    assert jnp.allclose(out, ref_out, atol=2e-3, rtol=2e-3)
    assert jnp.allclose(h_n, ref_hn, atol=2e-3, rtol=2e-3)
    assert jnp.allclose(c_n, ref_cn, atol=2e-3, rtol=2e-3)

    print("KERNEL_OK")
</pallas_src>

<mosaic_0001>
module attributes {stable_mosaic.version = 11 : i64} {
  func.func @_lstm2_kernel(%arg0: i32, %arg1: memref<8x1xi32, #tpu.memory_space<vmem>>, %arg2: memref<8x8x128xf32, #tpu.memory_space<vmem>>, %arg3: memref<32x128xf32, #tpu.memory_space<vmem>>, %arg4: memref<64x128xf32, #tpu.memory_space<vmem>>, %arg5: memref<1x128xf32, #tpu.memory_space<vmem>>, %arg6: memref<1x8x256xf32, #tpu.memory_space<vmem>>, %arg7: memref<2x8x32xf32, #tpu.memory_space<vmem>>, %arg8: memref<2x8x32xf32, #tpu.memory_space<vmem>>, %arg9: memref<8x32xf32, #tpu.memory_space<vmem>>, %arg10: memref<8x32xf32, #tpu.memory_space<vmem>>, %arg11: memref<8x32xf32, #tpu.memory_space<vmem>>, %arg12: memref<8x32xf32, #tpu.memory_space<vmem>>) attributes {dimension_semantics = [#tpu.dimension_semantics<arbitrary>], iteration_bounds = array<i64: 1>, scalar_prefetch = 0 : i64, scratch_operands = 4 : i64, tpu.core_type = #tpu.core_type<tc>, window_params = [{pipeline_mode = #tpu.pipeline_mode<synchronous>, transform_indices = @transform_0, window_bounds = array<i64: 8, 1>}, {transform_indices = @transform_1, window_bounds = array<i64: 8, 8, 128>}, {pipeline_mode = #tpu.pipeline_mode<synchronous>, transform_indices = @transform_2, window_bounds = array<i64: 32, 128>}, {pipeline_mode = #tpu.pipeline_mode<synchronous>, transform_indices = @transform_3, window_bounds = array<i64: 64, 128>}, {pipeline_mode = #tpu.pipeline_mode<synchronous>, transform_indices = @transform_4, window_bounds = array<i64: 1, 128>}, {transform_indices = @transform_5, window_bounds = array<i64: 1, 8, 256>}, {pipeline_mode = #tpu.pipeline_mode<synchronous>, transform_indices = @transform_6, window_bounds = array<i64: 2, 8, 32>}, {pipeline_mode = #tpu.pipeline_mode<synchronous>, transform_indices = @transform_7, window_bounds = array<i64: 2, 8, 32>}]} {
    %c0_i32 = arith.constant 0 : i32
    %0 = arith.cmpi eq, %arg0, %c0_i32 : i32
    %1 = arith.extui %0 : i1 to i32
    %c0_i32_0 = arith.constant 0 : i32
    %2 = arith.cmpi ne, %1, %c0_i32_0 : i32
    scf.if %2 {
      %cst_100 = arith.constant 0.000000e+00 : f32
      %515 = vector.broadcast %cst_100 : f32 to vector<8x32xf32>
      %c0_101 = arith.constant 0 : index
      %c0_102 = arith.constant 0 : index
      %516 = vector.load %arg9[%c0_101, %c0_102] : memref<8x32xf32, #tpu.memory_space<vmem>>, vector<8x32xf32>
      tpu.vector_store %arg9[%c0_101, %c0_102], %515 {strides = array<i32>} : memref<8x32xf32, #tpu.memory_space<vmem>>, vector<8x32xf32>,
      %cst_103 = arith.constant 0.000000e+00 : f32
      %517 = vector.broadcast %cst_103 : f32 to vector<8x32xf32>
      %c0_104 = arith.constant 0 : index
      %c0_105 = arith.constant 0 : index
      %518 = vector.load %arg10[%c0_104, %c0_105] : memref<8x32xf32, #tpu.memory_space<vmem>>, vector<8x32xf32>
      tpu.vector_store %arg10[%c0_104, %c0_105], %517 {strides = array<i32>} : memref<8x32xf32, #tpu.memory_space<vmem>>, vector<8x32xf32>,
      %cst_106 = arith.constant 0.000000e+00 : f32
      %519 = vector.broadcast %cst_106 : f32 to vector<8x32xf32>
      %c0_107 = arith.constant 0 : index
      %c0_108 = arith.constant 0 : index
      %520 = vector.load %arg11[%c0_107, %c0_108] : memref<8x32xf32, #tpu.memory_space<vmem>>, vector<8x32xf32>
      tpu.vector_store %arg11[%c0_107, %c0_108], %519 {strides = array<i32>} : memref<8x32xf32, #tpu.memory_space<vmem>>, vector<8x32xf32>,
      %cst_109 = arith.constant 0.000000e+00 : f32
      %521 = vector.broadcast %cst_109 : f32 to vector<8x32xf32>
      %c0_110 = arith.constant 0 : index
      %c0_111 = arith.constant 0 : index
      %522 = vector.load %arg12[%c0_110, %c0_111] : memref<8x32xf32, #tpu.memory_space<vmem>>, vector<8x32xf32>
      tpu.vector_store %arg12[%c0_110, %c0_111], %521 {strides = array<i32>} : memref<8x32xf32, #tpu.memory_space<vmem>>, vector<8x32xf32>,
    } else {
    }
    %c0 = arith.constant 0 : index
    %c0_1 = arith.constant 0 : index
    %3 = vector.load %arg1[%c0, %c0_1] : memref<8x1xi32, #tpu.memory_space<vmem>>, vector<8x1xi32>
    %c0_2 = arith.constant 0 : index
    %c0_3 = arith.constant 0 : index
    %4 = vector.load %arg3[%c0_2, %c0_3] : memref<32x128xf32, #tpu.memory_space<vmem>>, vector<32x128xf32>
    %c0_4 = arith.constant 0 : index
    %c0_5 = arith.constant 0 : index
    %5 = vector.load %arg4[%c0_4, %c0_5] : memref<64x128xf32, #tpu.memory_space<vmem>>, vector<64x128xf32>
    %c0_6 = arith.constant 0 : index
    %c0_7 = arith.constant 0 : index
    %6 = vector.load %arg5[%c0_6, %c0_7] : memref<1x128xf32, #tpu.memory_space<vmem>>, vector<1x128xf32>
    %c8_i32 = arith.constant 8 : i32
    %7 = arith.muli %arg0, %c8_i32 : i32
    %c0_8 = arith.constant 0 : index
    %c0_9 = arith.constant 0 : index
    %8 = vector.load %arg9[%c0_8, %c0_9] : memref<8x32xf32, #tpu.memory_space<vmem>>, vector<8x32xf32>
    %c0_10 = arith.constant 0 : index
    %c0_11 = arith.constant 0 : index
    %9 = vector.load %arg10[%c0_10, %c0_11] : memref<8x32xf32, #tpu.memory_space<vmem>>, vector<8x32xf32>
    %c0_12 = arith.constant 0 : index
    %c0_13 = arith.constant 0 : index
    %10 = vector.load %arg11[%c0_12, %c0_13] : memref<8x32xf32, #tpu.memory_space<vmem>>, vector<8x32xf32>
    %c0_14 = arith.constant 0 : index
    %c0_15 = arith.constant 0 : index
    %11 = vector.load %arg12[%c0_14, %c0_15] : memref<8x32xf32, #tpu.memory_space<vmem>>, vector<8x32xf32>
    %c0_i32_16 = arith.constant 0 : i32
    %12 = arith.addi %7, %c0_i32_16 : i32
    %13 = vector.broadcast %12 : i32 to vector<8x1xi32>
    %14 = arith.cmpi sgt, %3, %13 : vector<8x1xi32>
    %c0_17 = arith.constant 0 : index
    %c0_18 = arith.constant 0 : index
    %c0_19 = arith.constant 0 : index
    %15 = vector.load %arg2[%c0_17, %c0_18, %c0_19] : memref<8x8x128xf32, #tpu.memory_space<vmem>>, vector<1x8x128xf32>
    %16 = vector.shape_cast %15 : vector<1x8x128xf32> to vector<8x128xf32>
    %cst = arith.constant dense<0.000000e+00> : vector<8x128xf32>
    %17 = tpu.matmul %8, %4, %cst {dimension_numbers = #tpu.dot_dimension_numbers<[1], [0], [0], [1], [0, 0, 1, 1], [], []>} : vector<8x32xf32>, vector<32x128xf32>, vector<8x128xf32> -> vector<8x128xf32>
    %18 = arith.addf %16, %17 : vector<8x128xf32>
    %19 = vector.extract_strided_slice %18 {offsets = [0, 0], sizes = [8, 96], strides = [1, 1]} : vector<8x128xf32> to vector<8x96xf32>
    %20 = arith.negf %19 : vector<8x96xf32>
    %21 = math.exp %20 : vector<8x96xf32>
    %cst_20 = arith.constant 1.000000e+00 : f32
    %22 = vector.broadcast %cst_20 : f32 to vector<8x96xf32>
    %23 = arith.addf %22, %21 : vector<8x96xf32>
    %24 = arith.divf %22, %23 : vector<8x96xf32>
    %25 = vector.extract_strided_slice %18 {offsets = [0, 96], sizes = [8, 32], strides = [1, 1]} : vector<8x128xf32> to vector<8x32xf32>
    %26 = math.tanh %25 : vector<8x32xf32>
    %27 = vector.extract_strided_slice %24 {offsets = [0, 0], sizes = [8, 32], strides = [1, 1]} : vector<8x96xf32> to vector<8x32xf32>
    %28 = vector.extract_strided_slice %24 {offsets = [0, 32], sizes = [8, 32], strides = [1, 1]} : vector<8x96xf32> to vector<8x32xf32>
    %29 = vector.extract_strided_slice %24 {offsets = [0, 64], sizes = [8, 32], strides = [1, 1]} : vector<8x96xf32> to vector<8x32xf32>
    %30 = arith.mulf %28, %9 : vector<8x32xf32>
    %31 = arith.mulf %27, %26 : vector<8x32xf32>
    %32 = arith.addf %30, %31 : vector<8x32xf32>
    %33 = math.tanh %32 : vector<8x32xf32>
    %34 = arith.mulf %29, %33 : vector<8x32xf32>
    %35 = vector.shape_cast %14 : vector<8x1xi1> to vector<8x1xi1>
    %36 = vector.broadcast %35 : vector<8x1xi1> to vector<8x32xi1>
    %37 = arith.select %36, %34, %8 : vector<8x32xi1>, vector<8x32xf32>
    %38 = vector.shape_cast %14 : vector<8x1xi1> to vector<8x1xi1>
    %39 = vector.broadcast %38 : vector<8x1xi1> to vector<8x32xi1>
    %40 = arith.select %39, %32, %9 : vector<8x32xi1>, vector<8x32xf32>
    %41 = tpu.concatenate %37, %10 in 1 : vector<8x32xf32>, vector<8x32xf32> -> vector<8x64xf32>
    %cst_21 = arith.constant dense<0.000000e+00> : vector<8x128xf32>
    %42 = tpu.matmul %41, %5, %cst_21 {dimension_numbers = #tpu.dot_dimension_numbers<[1], [0], [0], [1], [0, 0, 1, 1], [], []>} : vector<8x64xf32>, vector<64x128xf32>, vector<8x128xf32> -> vector<8x128xf32>
    %43 = vector.broadcast %6 : vector<1x128xf32> to vector<8x128xf32>
    %44 = arith.addf %42, %43 : vector<8x128xf32>
    %45 = vector.extract_strided_slice %44 {offsets = [0, 0], sizes = [8, 96], strides = [1, 1]} : vector<8x128xf32> to vector<8x96xf32>
    %46 = arith.negf %45 : vector<8x96xf32>
    %47 = math.exp %46 : vector<8x96xf32>
    %cst_22 = arith.constant 1.000000e+00 : f32
    %48 = vector.broadcast %cst_22 : f32 to vector<8x96xf32>
    %49 = arith.addf %48, %47 : vector<8x96xf32>
    %50 = arith.divf %48, %49 : vector<8x96xf32>
    %51 = vector.extract_strided_slice %44 {offsets = [0, 96], sizes = [8, 32], strides = [1, 1]} : vector<8x128xf32> to vector<8x32xf32>
    %52 = math.tanh %51 : vector<8x32xf32>
    %53 = vector.extract_strided_slice %50 {offsets = [0, 0], sizes = [8, 32], strides = [1, 1]} : vector<8x96xf32> to vector<8x32xf32>
    %54 = vector.extract_strided_slice %50 {offsets = [0, 32], sizes = [8, 32], strides = [1, 1]} : vector<8x96xf32> to vector<8x32xf32>
    %55 = vector.extract_strided_slice %50 {offsets = [0, 64], sizes = [8, 32], strides = [1, 1]} : vector<8x96xf32> to vector<8x32xf32>
    %56 = arith.mulf %54, %11 : vector<8x32xf32>
    %57 = arith.mulf %53, %52 : vector<8x32xf32>
    %58 = arith.addf %56, %57 : vector<8x32xf32>
    %59 = math.tanh %58 : vector<8x32xf32>
    %60 = arith.mulf %55, %59 : vector<8x32xf32>
    %61 = vector.shape_cast %14 : vector<8x1xi1> to vector<8x1xi1>
    %62 = vector.broadcast %61 : vector<8x1xi1> to vector<8x32xi1>
    %63 = arith.select %62, %60, %10 : vector<8x32xi1>, vector<8x32xf32>
    %64 = vector.shape_cast %14 : vector<8x1xi1> to vector<8x1xi1>
    %65 = vector.broadcast %64 : vector<8x1xi1> to vector<8x32xi1>
    %66 = arith.select %65, %58, %11 : vector<8x32xi1>, vector<8x32xf32>
    %cst_23 = arith.constant 0.000000e+00 : f32
    %67 = vector.shape_cast %14 : vector<8x1xi1> to vector<8x1xi1>
    %68 = vector.broadcast %67 : vector<8x1xi1> to vector<8x32xi1>
    %69 = vector.broadcast %cst_23 : f32 to vector<8x32xf32>
    %70 = arith.select %68, %63, %69 : vector<8x32xi1>, vector<8x32xf32>
    %c0_24 = arith.constant 0 : index
    %c0_25 = arith.constant 0 : index
    %c0_26 = arith.constant 0 : index
    %71 = vector.load %arg6[%c0_24, %c0_25, %c0_26] : memref<1x8x256xf32, #tpu.memory_space<vmem>>, vector<1x8x32xf32>
    %72 = vector.shape_cast %71 : vector<1x8x32xf32> to vector<8x32xf32>
    %73 = vector.shape_cast %70 : vector<8x32xf32> to vector<1x8x32xf32>
    tpu.vector_store %arg6[%c0_24, %c0_25, %c0_26], %73 {strides = array<i32>} : memref<1x8x256xf32, #tpu.memory_space<vmem>>, vector<1x8x32xf32>,
    %c1_i32 = arith.constant 1 : i32
    %74 = arith.addi %7, %c1_i32 : i32
    %75 = vector.broadcast %74 : i32 to vector<8x1xi32>
    %76 = arith.cmpi sgt, %3, %75 : vector<8x1xi32>
    %c1 = arith.constant 1 : index
    %c0_27 = arith.constant 0 : index
    %c0_28 = arith.constant 0 : index
    %77 = vector.load %arg2[%c1, %c0_27, %c0_28] : memref<8x8x128xf32, #tpu.memory_space<vmem>>, vector<1x8x128xf32>
    %78 = vector.shape_cast %77 : vector<1x8x128xf32> to vector<8x128xf32>
    %cst_29 = arith.constant dense<0.000000e+00> : vector<8x128xf32>
    %79 = tpu.matmul %37, %4, %cst_29 {dimension_numbers = #tpu.dot_dimension_numbers<[1], [0], [0], [1], [0, 0, 1, 1], [], []>} : vector<8x32xf32>, vector<32x128xf32>, vector<8x128xf32> -> vector<8x128xf32>
    %80 = arith.addf %78, %79 : vector<8x128xf32>
    %81 = vector.extract_strided_slice %80 {offsets = [0, 0], sizes = [8, 96], strides = [1, 1]} : vector<8x128xf32> to vector<8x96xf32>
    %82 = arith.negf %81 : vector<8x96xf32>
    %83 = math.exp %82 : vector<8x96xf32>
    %cst_30 = arith.constant 1.000000e+00 : f32
    %84 = vector.broadcast %cst_30 : f32 to vector<8x96xf32>
    %85 = arith.addf %84, %83 : vector<8x96xf32>
    %86 = arith.divf %84, %85 : vector<8x96xf32>
    %87 = vector.extract_strided_slice %80 {offsets = [0, 96], sizes = [8, 32], strides = [1, 1]} : vector<8x128xf32> to vector<8x32xf32>
    %88 = math.tanh %87 : vector<8x32xf32>
    %89 = vector.extract_strided_slice %86 {offsets = [0, 0], sizes = [8, 32], strides = [1, 1]} : vector<8x96xf32> to vector<8x32xf32>
    %90 = vector.extract_strided_slice %86 {offsets = [0, 32], sizes = [8, 32], strides = [1, 1]} : vector<8x96xf32> to vector<8x32xf32>
    %91 = vector.extract_strided_slice %86 {offsets = [0, 64], sizes = [8, 32], strides = [1, 1]} : vector<8x96xf32> to vector<8x32xf32>
    %92 = arith.mulf %90, %40 : vector<8x32xf32>
    %93 = arith.mulf %89, %88 : vector<8x32xf32>
    %94 = arith.addf %92, %93 : vector<8x32xf32>
    %95 = math.tanh %94 : vector<8x32xf32>
    %96 = arith.mulf %91, %95 : vector<8x32xf32>
    %97 = vector.shape_cast %76 : vector<8x1xi1> to vector<8x1xi1>
    %98 = vector.broadcast %97 : vector<8x1xi1> to vector<8x32xi1>
    %99 = arith.select %98, %96, %37 : vector<8x32xi1>, vector<8x32xf32>
    %100 = vector.shape_cast %76 : vector<8x1xi1> to vector<8x1xi1>
    %101 = vector.broadcast %100 : vector<8x1xi1> to vector<8x32xi1>
    %102 = arith.select %101, %94, %40 : vector<8x32xi1>, vector<8x32xf32>
    %103 = tpu.concatenate %99, %63 in 1 : vector<8x32xf32>, vector<8x32xf32> -> vector<8x64xf32>
    %cst_31 = arith.constant dense<0.000000e+00> : vector<8x128xf32>
    %104 = tpu.matmul %103, %5, %cst_31 {dimension_numbers = #tpu.dot_dimension_numbers<[1], [0], [0], [1], [0, 0, 1, 1], [], []>} : vector<8x64xf32>, vector<64x128xf32>, vector<8x128xf32> -> vector<8x128xf32>
    %105 = vector.broadcast %6 : vector<1x128xf32> to vector<8x128xf32>
    %106 = arith.addf %104, %105 : vector<8x128xf32>
    %107 = vector.extract_strided_slice %106 {offsets = [0, 0], sizes = [8, 96], strides = [1, 1]} : vector<8x128xf32> to vector<8x96xf32>
    %108 = arith.negf %107 : vector<8x96xf32>
    %109 = math.exp %108 : vector<8x96xf32>
    %cst_32 = arith.constant 1.000000e+00 : f32
    %110 = vector.broadcast %cst_32 : f32 to vector<8x96xf32>
    %111 = arith.addf %110, %109 : vector<8x96xf32>
    %112 = arith.divf %110, %111 : vector<8x96xf32>
    %113 = vector.extract_strided_slice %106 {offsets = [0, 96], sizes = [8, 32], strides = [1, 1]} : vector<8x128xf32> to vector<8x32xf32>
    %114 = math.tanh %113 : vector<8x32xf32>
    %115 = vector.extract_strided_slice %112 {offsets = [0, 0], sizes = [8, 32], strides = [1, 1]} : vector<8x96xf32> to vector<8x32xf32>
    %116 = vector.extract_strided_slice %112 {offsets = [0, 32], sizes = [8, 32], strides = [1, 1]} : vector<8x96xf32> to vector<8x32xf32>
    %117 = vector.extract_strided_slice %112 {offsets = [0, 64], sizes = [8, 32], strides = [1, 1]} : vector<8x96xf32> to vector<8x32xf32>
    %118 = arith.mulf %116, %66 : vector<8x32xf32>
    %119 = arith.mulf %115, %114 : vector<8x32xf32>
    %120 = arith.addf %118, %119 : vector<8x32xf32>
    %121 = math.tanh %120 : vector<8x32xf32>
    %122 = arith.mulf %117, %121 : vector<8x32xf32>
    %123 = vector.shape_cast %76 : vector<8x1xi1> to vector<8x1xi1>
    %124 = vector.broadcast %123 : vector<8x1xi1> to vector<8x32xi1>
    %125 = arith.select %124, %122, %63 : vector<8x32xi1>, vector<8x32xf32>
    %126 = vector.shape_cast %76 : vector<8x1xi1> to vector<8x1xi1>
    %127 = vector.broadcast %126 : vector<8x1xi1> to vector<8x32xi1>
    %128 = arith.select %127, %120, %66 : vector<8x32xi1>, vector<8x32xf32>
    %cst_33 = arith.constant 0.000000e+00 : f32
    %129 = vector.shape_cast %76 : vector<8x1xi1> to vector<8x1xi1>
    %130 = vector.broadcast %129 : vector<8x1xi1> to vector<8x32xi1>
    %131 = vector.broadcast %cst_33 : f32 to vector<8x32xf32>
    %132 = arith.select %130, %125, %131 : vector<8x32xi1>, vector<8x32xf32>
    %c0_34 = arith.constant 0 : index
    %c0_35 = arith.constant 0 : index
    %c32 = arith.constant 32 : index
    %133 = vector.load %arg6[%c0_34, %c0_35, %c32] : memref<1x8x256xf32, #tpu.memory_space<vmem>>, vector<1x8x32xf32>
    %134 = vector.shape_cast %133 : vector<1x8x32xf32> to vector<8x32xf32>
    %135 = vector.shape_cast %132 : vector<8x32xf32> to vector<1x8x32xf32>
    tpu.vector_store %arg6[%c0_34, %c0_35, %c32], %135 {strides = array<i32>} : memref<1x8x256xf32, #tpu.memory_space<vmem>>, vector<1x8x32xf32>,
    %c2_i32 = arith.constant 2 : i32
    %136 = arith.addi %7, %c2_i32 : i32
    %137 = vector.broadcast %136 : i32 to vector<8x1xi32>
    %138 = arith.cmpi sgt, %3, %137 : vector<8x1xi32>
    %c2 = arith.constant 2 : index
    %c0_36 = arith.constant 0 : index
    %c0_37 = arith.constant 0 : index
    %139 = vector.load %arg2[%c2, %c0_36, %c0_37] : memref<8x8x128xf32, #tpu.memory_space<vmem>>, vector<1x8x128xf32>
    %140 = vector.shape_cast %139 : vector<1x8x128xf32> to vector<8x128xf32>
    %cst_38 = arith.constant dense<0.000000e+00> : vector<8x128xf32>
    %141 = tpu.matmul %99, %4, %cst_38 {dimension_numbers = #tpu.dot_dimension_numbers<[1], [0], [0], [1], [0, 0, 1, 1], [], []>} : vector<8x32xf32>, vector<32x128xf32>, vector<8x128xf32> -> vector<8x128xf32>
    %142 = arith.addf %140, %141 : vector<8x128xf32>
    %143 = vector.extract_strided_slice %142 {offsets = [0, 0], sizes = [8, 96], strides = [1, 1]} : vector<8x128xf32> to vector<8x96xf32>
    %144 = arith.negf %143 : vector<8x96xf32>
    %145 = math.exp %144 : vector<8x96xf32>
    %cst_39 = arith.constant 1.000000e+00 : f32
    %146 = vector.broadcast %cst_39 : f32 to vector<8x96xf32>
    %147 = arith.addf %146, %145 : vector<8x96xf32>
    %148 = arith.divf %146, %147 : vector<8x96xf32>
    %149 = vector.extract_strided_slice %142 {offsets = [0, 96], sizes = [8, 32], strides = [1, 1]} : vector<8x128xf32> to vector<8x32xf32>
    %150 = math.tanh %149 : vector<8x32xf32>
    %151 = vector.extract_strided_slice %148 {offsets = [0, 0], sizes = [8, 32], strides = [1, 1]} : vector<8x96xf32> to vector<8x32xf32>
    %152 = vector.extract_strided_slice %148 {offsets = [0, 32], sizes = [8, 32], strides = [1, 1]} : vector<8x96xf32> to vector<8x32xf32>
    %153 = vector.extract_strided_slice %148 {offsets = [0, 64], sizes = [8, 32], strides = [1, 1]} : vector<8x96xf32> to vector<8x32xf32>
    %154 = arith.mulf %152, %102 : vector<8x32xf32>
    %155 = arith.mulf %151, %150 : vector<8x32xf32>
    %156 = arith.addf %154, %155 : vector<8x32xf32>
    %157 = math.tanh %156 : vector<8x32xf32>
    %158 = arith.mulf %153, %157 : vector<8x32xf32>
    %159 = vector.shape_cast %138 : vector<8x1xi1> to vector<8x1xi1>
    %160 = vector.broadcast %159 : vector<8x1xi1> to vector<8x32xi1>
    %161 = arith.select %160, %158, %99 : vector<8x32xi1>, vector<8x32xf32>
    %162 = vector.shape_cast %138 : vector<8x1xi1> to vector<8x1xi1>
    %163 = vector.broadcast %162 : vector<8x1xi1> to vector<8x32xi1>
    %164 = arith.select %163, %156, %102 : vector<8x32xi1>, vector<8x32xf32>
    %165 = tpu.concatenate %161, %125 in 1 : vector<8x32xf32>, vector<8x32xf32> -> vector<8x64xf32>
    %cst_40 = arith.constant dense<0.000000e+00> : vector<8x128xf32>
    %166 = tpu.matmul %165, %5, %cst_40 {dimension_numbers = #tpu.dot_dimension_numbers<[1], [0], [0], [1], [0, 0, 1, 1], [], []>} : vector<8x64xf32>, vector<64x128xf32>, vector<8x128xf32> -> vector<8x128xf32>
    %167 = vector.broadcast %6 : vector<1x128xf32> to vector<8x128xf32>
    %168 = arith.addf %166, %167 : vector<8x128xf32>
    %169 = vector.extract_strided_slice %168 {offsets = [0, 0], sizes = [8, 96], strides = [1, 1]} : vector<8x128xf32> to vector<8x96xf32>
    %170 = arith.negf %169 : vector<8x96xf32>
    %171 = math.exp %170 : vector<8x96xf32>
    %cst_41 = arith.constant 1.000000e+00 : f32
    %172 = vector.broadcast %cst_41 : f32 to vector<8x96xf32>
    %173 = arith.addf %172, %171 : vector<8x96xf32>
    %174 = arith.divf %172, %173 : vector<8x96xf32>
    %175 = vector.extract_strided_slice %168 {offsets = [0, 96], sizes = [8, 32], strides = [1, 1]} : vector<8x128xf32> to vector<8x32xf32>
    %176 = math.tanh %175 : vector<8x32xf32>
    %177 = vector.extract_strided_slice %174 {offsets = [0, 0], sizes = [8, 32], strides = [1, 1]} : vector<8x96xf32> to vector<8x32xf32>
    %178 = vector.extract_strided_slice %174 {offsets = [0, 32], sizes = [8, 32], strides = [1, 1]} : vector<8x96xf32> to vector<8x32xf32>
    %179 = vector.extract_strided_slice %174 {offsets = [0, 64], sizes = [8, 32], strides = [1, 1]} : vector<8x96xf32> to vector<8x32xf32>
    %180 = arith.mulf %178, %128 : vector<8x32xf32>
    %181 = arith.mulf %177, %176 : vector<8x32xf32>
    %182 = arith.addf %180, %181 : vector<8x32xf32>
    %183 = math.tanh %182 : vector<8x32xf32>
    %184 = arith.mulf %179, %183 : vector<8x32xf32>
    %185 = vector.shape_cast %138 : vector<8x1xi1> to vector<8x1xi1>
    %186 = vector.broadcast %185 : vector<8x1xi1> to vector<8x32xi1>
    %187 = arith.select %186, %184, %125 : vector<8x32xi1>, vector<8x32xf32>
    %188 = vector.shape_cast %138 : vector<8x1xi1> to vector<8x1xi1>
    %189 = vector.broadcast %188 : vector<8x1xi1> to vector<8x32xi1>
    %190 = arith.select %189, %182, %128 : vector<8x32xi1>, vector<8x32xf32>
    %cst_42 = arith.constant 0.000000e+00 : f32
    %191 = vector.shape_cast %138 : vector<8x1xi1> to vector<8x1xi1>
    %192 = vector.broadcast %191 : vector<8x1xi1> to vector<8x32xi1>
    %193 = vector.broadcast %cst_42 : f32 to vector<8x32xf32>
    %194 = arith.select %192, %187, %193 : vector<8x32xi1>, vector<8x32xf32>
    %c0_43 = arith.constant 0 : index
    %c0_44 = arith.constant 0 : index
    %c64 = arith.constant 64 : index
    %195 = vector.load %arg6[%c0_43, %c0_44, %c64] : memref<1x8x256xf32, #tpu.memory_space<vmem>>, vector<1x8x32xf32>
    %196 = vector.shape_cast %195 : vector<1x8x32xf32> to vector<8x32xf32>
    %197 = vector.shape_cast %194 : vector<8x32xf32> to vector<1x8x32xf32>
    tpu.vector_store %arg6[%c0_43, %c0_44, %c64], %197 {strides = array<i32>} : memref<1x8x256xf32, #tpu.memory_space<vmem>>, vector<1x8x32xf32>,
    %c3_i32 = arith.constant 3 : i32
    %198 = arith.addi %7, %c3_i32 : i32
    %199 = vector.broadcast %198 : i32 to vector<8x1xi32>
    %200 = arith.cmpi sgt, %3, %199 : vector<8x1xi32>
    %c3 = arith.constant 3 : index
    %c0_45 = arith.constant 0 : index
    %c0_46 = arith.constant 0 : index
    %201 = vector.load %arg2[%c3, %c0_45, %c0_46] : memref<8x8x128xf32, #tpu.memory_space<vmem>>, vector<1x8x128xf32>
    %202 = vector.shape_cast %201 : vector<1x8x128xf32> to vector<8x128xf32>
    %cst_47 = arith.constant dense<0.000000e+00> : vector<8x128xf32>
    %203 = tpu.matmul %161, %4, %cst_47 {dimension_numbers = #tpu.dot_dimension_numbers<[1], [0], [0], [1], [0, 0, 1, 1], [], []>} : vector<8x32xf32>, vector<32x128xf32>, vector<8x128xf32> -> vector<8x128xf32>
    %204 = arith.addf %202, %203 : vector<8x128xf32>
    %205 = vector.extract_strided_slice %204 {offsets = [0, 0], sizes = [8, 96], strides = [1, 1]} : vector<8x128xf32> to vector<8x96xf32>
    %206 = arith.negf %205 : vector<8x96xf32>
    %207 = math.exp %206 : vector<8x96xf32>
    %cst_48 = arith.constant 1.000000e+00 : f32
    %208 = vector.broadcast %cst_48 : f32 to vector<8x96xf32>
    %209 = arith.addf %208, %207 : vector<8x96xf32>
    %210 = arith.divf %208, %209 : vector<8x96xf32>
    %211 = vector.extract_strided_slice %204 {offsets = [0, 96], sizes = [8, 32], strides = [1, 1]} : vector<8x128xf32> to vector<8x32xf32>
    %212 = math.tanh %211 : vector<8x32xf32>
    %213 = vector.extract_strided_slice %210 {offsets = [0, 0], sizes = [8, 32], strides = [1, 1]} : vector<8x96xf32> to vector<8x32xf32>
    %214 = vector.extract_strided_slice %210 {offsets = [0, 32], sizes = [8, 32], strides = [1, 1]} : vector<8x96xf32> to vector<8x32xf32>
    %215 = vector.extract_strided_slice %210 {offsets = [0, 64], sizes = [8, 32], strides = [1, 1]} : vector<8x96xf32> to vector<8x32xf32>
    %216 = arith.mulf %214, %164 : vector<8x32xf32>
    %217 = arith.mulf %213, %212 : vector<8x32xf32>
    %218 = arith.addf %216, %217 : vector<8x32xf32>
    %219 = math.tanh %218 : vector<8x32xf32>
    %220 = arith.mulf %215, %219 : vector<8x32xf32>
    %221 = vector.shape_cast %200 : vector<8x1xi1> to vector<8x1xi1>
    %222 = vector.broadcast %221 : vector<8x1xi1> to vector<8x32xi1>
    %223 = arith.select %222, %220, %161 : vector<8x32xi1>, vector<8x32xf32>
    %224 = vector.shape_cast %200 : vector<8x1xi1> to vector<8x1xi1>
    %225 = vector.broadcast %224 : vector<8x1xi1> to vector<8x32xi1>
    %226 = arith.select %225, %218, %164 : vector<8x32xi1>, vector<8x32xf32>
    %227 = tpu.concatenate %223, %187 in 1 : vector<8x32xf32>, vector<8x32xf32> -> vector<8x64xf32>
    %cst_49 = arith.constant dense<0.000000e+00> : vector<8x128xf32>
    %228 = tpu.matmul %227, %5, %cst_49 {dimension_numbers = #tpu.dot_dimension_numbers<[1], [0], [0], [1], [0, 0, 1, 1], [], []>} : vector<8x64xf32>, vector<64x128xf32>, vector<8x128xf32> -> vector<8x128xf32>
    %229 = vector.broadcast %6 : vector<1x128xf32> to vector<8x128xf32>
    %230 = arith.addf %228, %229 : vector<8x128xf32>
    %231 = vector.extract_strided_slice %230 {offsets = [0, 0], sizes = [8, 96], strides = [1, 1]} : vector<8x128xf32> to vector<8x96xf32>
    %232 = arith.negf %231 : vector<8x96xf32>
    %233 = math.exp %232 : vector<8x96xf32>
    %cst_50 = arith.constant 1.000000e+00 : f32
    %234 = vector.broadcast %cst_50 : f32 to vector<8x96xf32>
    %235 = arith.addf %234, %233 : vector<8x96xf32>
    %236 = arith.divf %234, %235 : vector<8x96xf32>
    %237 = vector.extract_strided_slice %230 {offsets = [0, 96], sizes = [8, 32], strides = [1, 1]} : vector<8x128xf32> to vector<8x32xf32>
    %238 = math.tanh %237 : vector<8x32xf32>
    %239 = vector.extract_strided_slice %236 {offsets = [0, 0], sizes = [8, 32], strides = [1, 1]} : vector<8x96xf32> to vector<8x32xf32>
    %240 = vector.extract_strided_slice %236 {offsets = [0, 32], sizes = [8, 32], strides = [1, 1]} : vector<8x96xf32> to vector<8x32xf32>
    %241 = vector.extract_strided_slice %236 {offsets = [0, 64], sizes = [8, 32], strides = [1, 1]} : vector<8x96xf32> to vector<8x32xf32>
    %242 = arith.mulf %240, %190 : vector<8x32xf32>
    %243 = arith.mulf %239, %238 : vector<8x32xf32>
    %244 = arith.addf %242, %243 : vector<8x32xf32>
    %245 = math.tanh %244 : vector<8x32xf32>
    %246 = arith.mulf %241, %245 : vector<8x32xf32>
    %247 = vector.shape_cast %200 : vector<8x1xi1> to vector<8x1xi1>
    %248 = vector.broadcast %247 : vector<8x1xi1> to vector<8x32xi1>
    %249 = arith.select %248, %246, %187 : vector<8x32xi1>, vector<8x32xf32>
    %250 = vector.shape_cast %200 : vector<8x1xi1> to vector<8x1xi1>
    %251 = vector.broadcast %250 : vector<8x1xi1> to vector<8x32xi1>
    %252 = arith.select %251, %244, %190 : vector<8x32xi1>, vector<8x32xf32>
    %cst_51 = arith.constant 0.000000e+00 : f32
    %253 = vector.shape_cast %200 : vector<8x1xi1> to vector<8x1xi1>
    %254 = vector.broadcast %253 : vector<8x1xi1> to vector<8x32xi1>
    %255 = vector.broadcast %cst_51 : f32 to vector<8x32xf32>
    %256 = arith.select %254, %249, %255 : vector<8x32xi1>, vector<8x32xf32>
    %c0_52 = arith.constant 0 : index
    %c0_53 = arith.constant 0 : index
    %c96 = arith.constant 96 : index
    %257 = vector.load %arg6[%c0_52, %c0_53, %c96] : memref<1x8x256xf32, #tpu.memory_space<vmem>>, vector<1x8x32xf32>
    %258 = vector.shape_cast %257 : vector<1x8x32xf32> to vector<8x32xf32>
    %259 = vector.shape_cast %256 : vector<8x32xf32> to vector<1x8x32xf32>
    tpu.vector_store %arg6[%c0_52, %c0_53, %c96], %259 {strides = array<i32>} : memref<1x8x256xf32, #tpu.memory_space<vmem>>, vector<1x8x32xf32>,
    %c4_i32 = arith.constant 4 : i32
    %260 = arith.addi %7, %c4_i32 : i32
    %261 = vector.broadcast %260 : i32 to vector<8x1xi32>
    %262 = arith.cmpi sgt, %3, %261 : vector<8x1xi32>
    %c4 = arith.constant 4 : index
    %c0_54 = arith.constant 0 : index
    %c0_55 = arith.constant 0 : index
    %263 = vector.load %arg2[%c4, %c0_54, %c0_55] : memref<8x8x128xf32, #tpu.memory_space<vmem>>, vector<1x8x128xf32>
    %264 = vector.shape_cast %263 : vector<1x8x128xf32> to vector<8x128xf32>
    %cst_56 = arith.constant dense<0.000000e+00> : vector<8x128xf32>
    %265 = tpu.matmul %223, %4, %cst_56 {dimension_numbers = #tpu.dot_dimension_numbers<[1], [0], [0], [1], [0, 0, 1, 1], [], []>} : vector<8x32xf32>, vector<32x128xf32>, vector<8x128xf32> -> vector<8x128xf32>
    %266 = arith.addf %264, %265 : vector<8x128xf32>
    %267 = vector.extract_strided_slice %266 {offsets = [0, 0], sizes = [8, 96], strides = [1, 1]} : vector<8x128xf32> to vector<8x96xf32>
    %268 = arith.negf %267 : vector<8x96xf32>
    %269 = math.exp %268 : vector<8x96xf32>
    %cst_57 = arith.constant 1.000000e+00 : f32
    %270 = vector.broadcast %cst_57 : f32 to vector<8x96xf32>
    %271 = arith.addf %270, %269 : vector<8x96xf32>
    %272 = arith.divf %270, %271 : vector<8x96xf32>
    %273 = vector.extract_strided_slice %266 {offsets = [0, 96], sizes = [8, 32], strides = [1, 1]} : vector<8x128xf32> to vector<8x32xf32>
    %274 = math.tanh %273 : vector<8x32xf32>
    %275 = vector.extract_strided_slice %272 {offsets = [0, 0], sizes = [8, 32], strides = [1, 1]} : vector<8x96xf32> to vector<8x32xf32>
    %276 = vector.extract_strided_slice %272 {offsets = [0, 32], sizes = [8, 32], strides = [1, 1]} : vector<8x96xf32> to vector<8x32xf32>
    %277 = vector.extract_strided_slice %272 {offsets = [0, 64], sizes = [8, 32], strides = [1, 1]} : vector<8x96xf32> to vector<8x32xf32>
    %278 = arith.mulf %276, %226 : vector<8x32xf32>
    %279 = arith.mulf %275, %274 : vector<8x32xf32>
    %280 = arith.addf %278, %279 : vector<8x32xf32>
    %281 = math.tanh %280 : vector<8x32xf32>
    %282 = arith.mulf %277, %281 : vector<8x32xf32>
    %283 = vector.shape_cast %262 : vector<8x1xi1> to vector<8x1xi1>
    %284 = vector.broadcast %283 : vector<8x1xi1> to vector<8x32xi1>
    %285 = arith.select %284, %282, %223 : vector<8x32xi1>, vector<8x32xf32>
    %286 = vector.shape_cast %262 : vector<8x1xi1> to vector<8x1xi1>
    %287 = vector.broadcast %286 : vector<8x1xi1> to vector<8x32xi1>
    %288 = arith.select %287, %280, %226 : vector<8x32xi1>, vector<8x32xf32>
    %289 = tpu.concatenate %285, %249 in 1 : vector<8x32xf32>, vector<8x32xf32> -> vector<8x64xf32>
    %cst_58 = arith.constant dense<0.000000e+00> : vector<8x128xf32>
    %290 = tpu.matmul %289, %5, %cst_58 {dimension_numbers = #tpu.dot_dimension_numbers<[1], [0], [0], [1], [0, 0, 1, 1], [], []>} : vector<8x64xf32>, vector<64x128xf32>, vector<8x128xf32> -> vector<8x128xf32>
    %291 = vector.broadcast %6 : vector<1x128xf32> to vector<8x128xf32>
    %292 = arith.addf %290, %291 : vector<8x128xf32>
    %293 = vector.extract_strided_slice %292 {offsets = [0, 0], sizes = [8, 96], strides = [1, 1]} : vector<8x128xf32> to vector<8x96xf32>
    %294 = arith.negf %293 : vector<8x96xf32>
    %295 = math.exp %294 : vector<8x96xf32>
    %cst_59 = arith.constant 1.000000e+00 : f32
    %296 = vector.broadcast %cst_59 : f32 to vector<8x96xf32>
    %297 = arith.addf %296, %295 : vector<8x96xf32>
    %298 = arith.divf %296, %297 : vector<8x96xf32>
    %299 = vector.extract_strided_slice %292 {offsets = [0, 96], sizes = [8, 32], strides = [1, 1]} : vector<8x128xf32> to vector<8x32xf32>
    %300 = math.tanh %299 : vector<8x32xf32>
    %301 = vector.extract_strided_slice %298 {offsets = [0, 0], sizes = [8, 32], strides = [1, 1]} : vector<8x96xf32> to vector<8x32xf32>
    %302 = vector.extract_strided_slice %298 {offsets = [0, 32], sizes = [8, 32], strides = [1, 1]} : vector<8x96xf32> to vector<8x32xf32>
    %303 = vector.extract_strided_slice %298 {offsets = [0, 64], sizes = [8, 32], strides = [1, 1]} : vector<8x96xf32> to vector<8x32xf32>
    %304 = arith.mulf %302, %252 : vector<8x32xf32>
    %305 = arith.mulf %301, %300 : vector<8x32xf32>
    %306 = arith.addf %304, %305 : vector<8x32xf32>
    %307 = math.tanh %306 : vector<8x32xf32>
    %308 = arith.mulf %303, %307 : vector<8x32xf32>
    %309 = vector.shape_cast %262 : vector<8x1xi1> to vector<8x1xi1>
    %310 = vector.broadcast %309 : vector<8x1xi1> to vector<8x32xi1>
    %311 = arith.select %310, %308, %249 : vector<8x32xi1>, vector<8x32xf32>
    %312 = vector.shape_cast %262 : vector<8x1xi1> to vector<8x1xi1>
    %313 = vector.broadcast %312 : vector<8x1xi1> to vector<8x32xi1>
    %314 = arith.select %313, %306, %252 : vector<8x32xi1>, vector<8x32xf32>
    %cst_60 = arith.constant 0.000000e+00 : f32
    %315 = vector.shape_cast %262 : vector<8x1xi1> to vector<8x1xi1>
    %316 = vector.broadcast %315 : vector<8x1xi1> to vector<8x32xi1>
    %317 = vector.broadcast %cst_60 : f32 to vector<8x32xf32>
    %318 = arith.select %316, %311, %317 : vector<8x32xi1>, vector<8x32xf32>
    %c0_61 = arith.constant 0 : index
    %c0_62 = arith.constant 0 : index
    %c128 = arith.constant 128 : index
    %319 = vector.load %arg6[%c0_61, %c0_62, %c128] : memref<1x8x256xf32, #tpu.memory_space<vmem>>, vector<1x8x32xf32>
    %320 = vector.shape_cast %319 : vector<1x8x32xf32> to vector<8x32xf32>
    %321 = vector.shape_cast %318 : vector<8x32xf32> to vector<1x8x32xf32>
    tpu.vector_store %arg6[%c0_61, %c0_62, %c128], %321 {strides = array<i32>} : memref<1x8x256xf32, #tpu.memory_space<vmem>>, vector<1x8x32xf32>,
    %c5_i32 = arith.constant 5 : i32
    %322 = arith.addi %7, %c5_i32 : i32
    %323 = vector.broadcast %322 : i32 to vector<8x1xi32>
    %324 = arith.cmpi sgt, %3, %323 : vector<8x1xi32>
    %c5 = arith.constant 5 : index
    %c0_63 = arith.constant 0 : index
    %c0_64 = arith.constant 0 : index
    %325 = vector.load %arg2[%c5, %c0_63, %c0_64] : memref<8x8x128xf32, #tpu.memory_space<vmem>>, vector<1x8x128xf32>
    %326 = vector.shape_cast %325 : vector<1x8x128xf32> to vector<8x128xf32>
    %cst_65 = arith.constant dense<0.000000e+00> : vector<8x128xf32>
    %327 = tpu.matmul %285, %4, %cst_65 {dimension_numbers = #tpu.dot_dimension_numbers<[1], [0], [0], [1], [0, 0, 1, 1], [], []>} : vector<8x32xf32>, vector<32x128xf32>, vector<8x128xf32> -> vector<8x128xf32>
    %328 = arith.addf %326, %327 : vector<8x128xf32>
    %329 = vector.extract_strided_slice %328 {offsets = [0, 0], sizes = [8, 96], strides = [1, 1]} : vector<8x128xf32> to vector<8x96xf32>
    %330 = arith.negf %329 : vector<8x96xf32>
    %331 = math.exp %330 : vector<8x96xf32>
    %cst_66 = arith.constant 1.000000e+00 : f32
    %332 = vector.broadcast %cst_66 : f32 to vector<8x96xf32>
    %333 = arith.addf %332, %331 : vector<8x96xf32>
    %334 = arith.divf %332, %333 : vector<8x96xf32>
    %335 = vector.extract_strided_slice %328 {offsets = [0, 96], sizes = [8, 32], strides = [1, 1]} : vector<8x128xf32> to vector<8x32xf32>
    %336 = math.tanh %335 : vector<8x32xf32>
    %337 = vector.extract_strided_slice %334 {offsets = [0, 0], sizes = [8, 32], strides = [1, 1]} : vector<8x96xf32> to vector<8x32xf32>
    %338 = vector.extract_strided_slice %334 {offsets = [0, 32], sizes = [8, 32], strides = [1, 1]} : vector<8x96xf32> to vector<8x32xf32>
    %339 = vector.extract_strided_slice %334 {offsets = [0, 64], sizes = [8, 32], strides = [1, 1]} : vector<8x96xf32> to vector<8x32xf32>
    %340 = arith.mulf %338, %288 : vector<8x32xf32>
    %341 = arith.mulf %337, %336 : vector<8x32xf32>
    %342 = arith.addf %340, %341 : vector<8x32xf32>
    %343 = math.tanh %342 : vector<8x32xf32>
    %344 = arith.mulf %339, %343 : vector<8x32xf32>
    %345 = vector.shape_cast %324 : vector<8x1xi1> to vector<8x1xi1>
    %346 = vector.broadcast %345 : vector<8x1xi1> to vector<8x32xi1>
    %347 = arith.select %346, %344, %285 : vector<8x32xi1>, vector<8x32xf32>
    %348 = vector.shape_cast %324 : vector<8x1xi1> to vector<8x1xi1>
    %349 = vector.broadcast %348 : vector<8x1xi1> to vector<8x32xi1>
    %350 = arith.select %349, %342, %288 : vector<8x32xi1>, vector<8x32xf32>
    %351 = tpu.concatenate %347, %311 in 1 : vector<8x32xf32>, vector<8x32xf32> -> vector<8x64xf32>
    %cst_67 = arith.constant dense<0.000000e+00> : vector<8x128xf32>
    %352 = tpu.matmul %351, %5, %cst_67 {dimension_numbers = #tpu.dot_dimension_numbers<[1], [0], [0], [1], [0, 0, 1, 1], [], []>} : vector<8x64xf32>, vector<64x128xf32>, vector<8x128xf32> -> vector<8x128xf32>
    %353 = vector.broadcast %6 : vector<1x128xf32> to vector<8x128xf32>
    %354 = arith.addf %352, %353 : vector<8x128xf32>
    %355 = vector.extract_strided_slice %354 {offsets = [0, 0], sizes = [8, 96], strides = [1, 1]} : vector<8x128xf32> to vector<8x96xf32>
    %356 = arith.negf %355 : vector<8x96xf32>
    %357 = math.exp %356 : vector<8x96xf32>
    %cst_68 = arith.constant 1.000000e+00 : f32
    %358 = vector.broadcast %cst_68 : f32 to vector<8x96xf32>
    %359 = arith.addf %358, %357 : vector<8x96xf32>
    %360 = arith.divf %358, %359 : vector<8x96xf32>
    %361 = vector.extract_strided_slice %354 {offsets = [0, 96], sizes = [8, 32], strides = [1, 1]} : vector<8x128xf32> to vector<8x32xf32>
    %362 = math.tanh %361 : vector<8x32xf32>
    %363 = vector.extract_strided_slice %360 {offsets = [0, 0], sizes = [8, 32], strides = [1, 1]} : vector<8x96xf32> to vector<8x32xf32>
    %364 = vector.extract_strided_slice %360 {offsets = [0, 32], sizes = [8, 32], strides = [1, 1]} : vector<8x96xf32> to vector<8x32xf32>
    %365 = vector.extract_strided_slice %360 {offsets = [0, 64], sizes = [8, 32], strides = [1, 1]} : vector<8x96xf32> to vector<8x32xf32>
    %366 = arith.mulf %364, %314 : vector<8x32xf32>
    %367 = arith.mulf %363, %362 : vector<8x32xf32>
    %368 = arith.addf %366, %367 : vector<8x32xf32>
    %369 = math.tanh %368 : vector<8x32xf32>
    %370 = arith.mulf %365, %369 : vector<8x32xf32>
    %371 = vector.shape_cast %324 : vector<8x1xi1> to vector<8x1xi1>
    %372 = vector.broadcast %371 : vector<8x1xi1> to vector<8x32xi1>
    %373 = arith.select %372, %370, %311 : vector<8x32xi1>, vector<8x32xf32>
    %374 = vector.shape_cast %324 : vector<8x1xi1> to vector<8x1xi1>
    %375 = vector.broadcast %374 : vector<8x1xi1> to vector<8x32xi1>
    %376 = arith.select %375, %368, %314 : vector<8x32xi1>, vector<8x32xf32>
    %cst_69 = arith.constant 0.000000e+00 : f32
    %377 = vector.shape_cast %324 : vector<8x1xi1> to vector<8x1xi1>
    %378 = vector.broadcast %377 : vector<8x1xi1> to vector<8x32xi1>
    %379 = vector.broadcast %cst_69 : f32 to vector<8x32xf32>
    %380 = arith.select %378, %373, %379 : vector<8x32xi1>, vector<8x32xf32>
    %c0_70 = arith.constant 0 : index
    %c0_71 = arith.constant 0 : index
    %c160 = arith.constant 160 : index
    %381 = vector.load %arg6[%c0_70, %c0_71, %c160] : memref<1x8x256xf32, #tpu.memory_space<vmem>>, vector<1x8x32xf32>
    %382 = vector.shape_cast %381 : vector<1x8x32xf32> to vector<8x32xf32>
    %383 = vector.shape_cast %380 : vector<8x32xf32> to vector<1x8x32xf32>
    tpu.vector_store %arg6[%c0_70, %c0_71, %c160], %383 {strides = array<i32>} : memref<1x8x256xf32, #tpu.memory_space<vmem>>, vector<1x8x32xf32>,
    %c6_i32 = arith.constant 6 : i32
    %384 = arith.addi %7, %c6_i32 : i32
    %385 = vector.broadcast %384 : i32 to vector<8x1xi32>
    %386 = arith.cmpi sgt, %3, %385 : vector<8x1xi32>
    %c6 = arith.constant 6 : index
    %c0_72 = arith.constant 0 : index
    %c0_73 = arith.constant 0 : index
    %387 = vector.load %arg2[%c6, %c0_72, %c0_73] : memref<8x8x128xf32, #tpu.memory_space<vmem>>, vector<1x8x128xf32>
    %388 = vector.shape_cast %387 : vector<1x8x128xf32> to vector<8x128xf32>
    %cst_74 = arith.constant dense<0.000000e+00> : vector<8x128xf32>
    %389 = tpu.matmul %347, %4, %cst_74 {dimension_numbers = #tpu.dot_dimension_numbers<[1], [0], [0], [1], [0, 0, 1, 1], [], []>} : vector<8x32xf32>, vector<32x128xf32>, vector<8x128xf32> -> vector<8x128xf32>
    %390 = arith.addf %388, %389 : vector<8x128xf32>
    %391 = vector.extract_strided_slice %390 {offsets = [0, 0], sizes = [8, 96], strides = [1, 1]} : vector<8x128xf32> to vector<8x96xf32>
    %392 = arith.negf %391 : vector<8x96xf32>
    %393 = math.exp %392 : vector<8x96xf32>
    %cst_75 = arith.constant 1.000000e+00 : f32
    %394 = vector.broadcast %cst_75 : f32 to vector<8x96xf32>
    %395 = arith.addf %394, %393 : vector<8x96xf32>
    %396 = arith.divf %394, %395 : vector<8x96xf32>
    %397 = vector.extract_strided_slice %390 {offsets = [0, 96], sizes = [8, 32], strides = [1, 1]} : vector<8x128xf32> to vector<8x32xf32>
    %398 = math.tanh %397 : vector<8x32xf32>
    %399 = vector.extract_strided_slice %396 {offsets = [0, 0], sizes = [8, 32], strides = [1, 1]} : vector<8x96xf32> to vector<8x32xf32>
    %400 = vector.extract_strided_slice %396 {offsets = [0, 32], sizes = [8, 32], strides = [1, 1]} : vector<8x96xf32> to vector<8x32xf32>
    %401 = vector.extract_strided_slice %396 {offsets = [0, 64], sizes = [8, 32], strides = [1, 1]} : vector<8x96xf32> to vector<8x32xf32>
    %402 = arith.mulf %400, %350 : vector<8x32xf32>
    %403 = arith.mulf %399, %398 : vector<8x32xf32>
    %404 = arith.addf %402, %403 : vector<8x32xf32>
    %405 = math.tanh %404 : vector<8x32xf32>
    %406 = arith.mulf %401, %405 : vector<8x32xf32>
    %407 = vector.shape_cast %386 : vector<8x1xi1> to vector<8x1xi1>
    %408 = vector.broadcast %407 : vector<8x1xi1> to vector<8x32xi1>
    %409 = arith.select %408, %406, %347 : vector<8x32xi1>, vector<8x32xf32>
    %410 = vector.shape_cast %386 : vector<8x1xi1> to vector<8x1xi1>
    %411 = vector.broadcast %410 : vector<8x1xi1> to vector<8x32xi1>
    %412 = arith.select %411, %404, %350 : vector<8x32xi1>, vector<8x32xf32>
    %413 = tpu.concatenate %409, %373 in 1 : vector<8x32xf32>, vector<8x32xf32> -> vector<8x64xf32>
    %cst_76 = arith.constant dense<0.000000e+00> : vector<8x128xf32>
    %414 = tpu.matmul %413, %5, %cst_76 {dimension_numbers = #tpu.dot_dimension_numbers<[1], [0], [0], [1], [0, 0, 1, 1], [], []>} : vector<8x64xf32>, vector<64x128xf32>, vector<8x128xf32> -> vector<8x128xf32>
    %415 = vector.broadcast %6 : vector<1x128xf32> to vector<8x128xf32>
    %416 = arith.addf %414, %415 : vector<8x128xf32>
    %417 = vector.extract_strided_slice %416 {offsets = [0, 0], sizes = [8, 96], strides = [1, 1]} : vector<8x128xf32> to vector<8x96xf32>
    %418 = arith.negf %417 : vector<8x96xf32>
    %419 = math.exp %418 : vector<8x96xf32>
    %cst_77 = arith.constant 1.000000e+00 : f32
    %420 = vector.broadcast %cst_77 : f32 to vector<8x96xf32>
    %421 = arith.addf %420, %419 : vector<8x96xf32>
    %422 = arith.divf %420, %421 : vector<8x96xf32>
    %423 = vector.extract_strided_slice %416 {offsets = [0, 96], sizes = [8, 32], strides = [1, 1]} : vector<8x128xf32> to vector<8x32xf32>
    %424 = math.tanh %423 : vector<8x32xf32>
    %425 = vector.extract_strided_slice %422 {offsets = [0, 0], sizes = [8, 32], strides = [1, 1]} : vector<8x96xf32> to vector<8x32xf32>
    %426 = vector.extract_strided_slice %422 {offsets = [0, 32], sizes = [8, 32], strides = [1, 1]} : vector<8x96xf32> to vector<8x32xf32>
    %427 = vector.extract_strided_slice %422 {offsets = [0, 64], sizes = [8, 32], strides = [1, 1]} : vector<8x96xf32> to vector<8x32xf32>
    %428 = arith.mulf %426, %376 : vector<8x32xf32>
    %429 = arith.mulf %425, %424 : vector<8x32xf32>
    %430 = arith.addf %428, %429 : vector<8x32xf32>
    %431 = math.tanh %430 : vector<8x32xf32>
    %432 = arith.mulf %427, %431 : vector<8x32xf32>
    %433 = vector.shape_cast %386 : vector<8x1xi1> to vector<8x1xi1>
    %434 = vector.broadcast %433 : vector<8x1xi1> to vector<8x32xi1>
    %435 = arith.select %434, %432, %373 : vector<8x32xi1>, vector<8x32xf32>
    %436 = vector.shape_cast %386 : vector<8x1xi1> to vector<8x1xi1>
    %437 = vector.broadcast %436 : vector<8x1xi1> to vector<8x32xi1>
    %438 = arith.select %437, %430, %376 : vector<8x32xi1>, vector<8x32xf32>
    %cst_78 = arith.constant 0.000000e+00 : f32
    %439 = vector.shape_cast %386 : vector<8x1xi1> to vector<8x1xi1>
    %440 = vector.broadcast %439 : vector<8x1xi1> to vector<8x32xi1>
    %441 = vector.broadcast %cst_78 : f32 to vector<8x32xf32>
    %442 = arith.select %440, %435, %441 : vector<8x32xi1>, vector<8x32xf32>
    %c0_79 = arith.constant 0 : index
    %c0_80 = arith.constant 0 : index
    %c192 = arith.constant 192 : index
    %443 = vector.load %arg6[%c0_79, %c0_80, %c192] : memref<1x8x256xf32, #tpu.memory_space<vmem>>, vector<1x8x32xf32>
    %444 = vector.shape_cast %443 : vector<1x8x32xf32> to vector<8x32xf32>
    %445 = vector.shape_cast %442 : vector<8x32xf32> to vector<1x8x32xf32>
    tpu.vector_store %arg6[%c0_79, %c0_80, %c192], %445 {strides = array<i32>} : memref<1x8x256xf32, #tpu.memory_space<vmem>>, vector<1x8x32xf32>,
    %c7_i32 = arith.constant 7 : i32
    %446 = arith.addi %7, %c7_i32 : i32
    %447 = vector.broadcast %446 : i32 to vector<8x1xi32>
    %448 = arith.cmpi sgt, %3, %447 : vector<8x1xi32>
    %c7 = arith.constant 7 : index
    %c0_81 = arith.constant 0 : index
    %c0_82 = arith.constant 0 : index
    %449 = vector.load %arg2[%c7, %c0_81, %c0_82] : memref<8x8x128xf32, #tpu.memory_space<vmem>>, vector<1x8x128xf32>
    %450 = vector.shape_cast %449 : vector<1x8x128xf32> to vector<8x128xf32>
    %cst_83 = arith.constant dense<0.000000e+00> : vector<8x128xf32>
    %451 = tpu.matmul %409, %4, %cst_83 {dimension_numbers = #tpu.dot_dimension_numbers<[1], [0], [0], [1], [0, 0, 1, 1], [], []>} : vector<8x32xf32>, vector<32x128xf32>, vector<8x128xf32> -> vector<8x128xf32>
    %452 = arith.addf %450, %451 : vector<8x128xf32>
    %453 = vector.extract_strided_slice %452 {offsets = [0, 0], sizes = [8, 96], strides = [1, 1]} : vector<8x128xf32> to vector<8x96xf32>
    %454 = arith.negf %453 : vector<8x96xf32>
    %455 = math.exp %454 : vector<8x96xf32>
    %cst_84 = arith.constant 1.000000e+00 : f32
    %456 = vector.broadcast %cst_84 : f32 to vector<8x96xf32>
    %457 = arith.addf %456, %455 : vector<8x96xf32>
    %458 = arith.divf %456, %457 : vector<8x96xf32>
    %459 = vector.extract_strided_slice %452 {offsets = [0, 96], sizes = [8, 32], strides = [1, 1]} : vector<8x128xf32> to vector<8x32xf32>
    %460 = math.tanh %459 : vector<8x32xf32>
    %461 = vector.extract_strided_slice %458 {offsets = [0, 0], sizes = [8, 32], strides = [1, 1]} : vector<8x96xf32> to vector<8x32xf32>
    %462 = vector.extract_strided_slice %458 {offsets = [0, 32], sizes = [8, 32], strides = [1, 1]} : vector<8x96xf32> to vector<8x32xf32>
    %463 = vector.extract_strided_slice %458 {offsets = [0, 64], sizes = [8, 32], strides = [1, 1]} : vector<8x96xf32> to vector<8x32xf32>
    %464 = arith.mulf %462, %412 : vector<8x32xf32>
    %465 = arith.mulf %461, %460 : vector<8x32xf32>
    %466 = arith.addf %464, %465 : vector<8x32xf32>
    %467 = math.tanh %466 : vector<8x32xf32>
    %468 = arith.mulf %463, %467 : vector<8x32xf32>
    %469 = vector.shape_cast %448 : vector<8x1xi1> to vector<8x1xi1>
    %470 = vector.broadcast %469 : vector<8x1xi1> to vector<8x32xi1>
    %471 = arith.select %470, %468, %409 : vector<8x32xi1>, vector<8x32xf32>
    %472 = vector.shape_cast %448 : vector<8x1xi1> to vector<8x1xi1>
    %473 = vector.broadcast %472 : vector<8x1xi1> to vector<8x32xi1>
    %474 = arith.select %473, %466, %412 : vector<8x32xi1>, vector<8x32xf32>
    %475 = tpu.concatenate %471, %435 in 1 : vector<8x32xf32>, vector<8x32xf32> -> vector<8x64xf32>
    %cst_85 = arith.constant dense<0.000000e+00> : vector<8x128xf32>
    %476 = tpu.matmul %475, %5, %cst_85 {dimension_numbers = #tpu.dot_dimension_numbers<[1], [0], [0], [1], [0, 0, 1, 1], [], []>} : vector<8x64xf32>, vector<64x128xf32>, vector<8x128xf32> -> vector<8x128xf32>
    %477 = vector.broadcast %6 : vector<1x128xf32> to vector<8x128xf32>
    %478 = arith.addf %476, %477 : vector<8x128xf32>
    %479 = vector.extract_strided_slice %478 {offsets = [0, 0], sizes = [8, 96], strides = [1, 1]} : vector<8x128xf32> to vector<8x96xf32>
    %480 = arith.negf %479 : vector<8x96xf32>
    %481 = math.exp %480 : vector<8x96xf32>
    %cst_86 = arith.constant 1.000000e+00 : f32
    %482 = vector.broadcast %cst_86 : f32 to vector<8x96xf32>
    %483 = arith.addf %482, %481 : vector<8x96xf32>
    %484 = arith.divf %482, %483 : vector<8x96xf32>
    %485 = vector.extract_strided_slice %478 {offsets = [0, 96], sizes = [8, 32], strides = [1, 1]} : vector<8x128xf32> to vector<8x32xf32>
    %486 = math.tanh %485 : vector<8x32xf32>
    %487 = vector.extract_strided_slice %484 {offsets = [0, 0], sizes = [8, 32], strides = [1, 1]} : vector<8x96xf32> to vector<8x32xf32>
    %488 = vector.extract_strided_slice %484 {offsets = [0, 32], sizes = [8, 32], strides = [1, 1]} : vector<8x96xf32> to vector<8x32xf32>
    %489 = vector.extract_strided_slice %484 {offsets = [0, 64], sizes = [8, 32], strides = [1, 1]} : vector<8x96xf32> to vector<8x32xf32>
    %490 = arith.mulf %488, %438 : vector<8x32xf32>
    %491 = arith.mulf %487, %486 : vector<8x32xf32>
    %492 = arith.addf %490, %491 : vector<8x32xf32>
    %493 = math.tanh %492 : vector<8x32xf32>
    %494 = arith.mulf %489, %493 : vector<8x32xf32>
    %495 = vector.shape_cast %448 : vector<8x1xi1> to vector<8x1xi1>
    %496 = vector.broadcast %495 : vector<8x1xi1> to vector<8x32xi1>
    %497 = arith.select %496, %494, %435 : vector<8x32xi1>, vector<8x32xf32>
    %498 = vector.shape_cast %448 : vector<8x1xi1> to vector<8x1xi1>
    %499 = vector.broadcast %498 : vector<8x1xi1> to vector<8x32xi1>
    %500 = arith.select %499, %492, %438 : vector<8x32xi1>, vector<8x32xf32>
    %cst_87 = arith.constant 0.000000e+00 : f32
    %501 = vector.shape_cast %448 : vector<8x1xi1> to vector<8x1xi1>
    %502 = vector.broadcast %501 : vector<8x1xi1> to vector<8x32xi1>
    %503 = vector.broadcast %cst_87 : f32 to vector<8x32xf32>
    %504 = arith.select %502, %497, %503 : vector<8x32xi1>, vector<8x32xf32>
    %c0_88 = arith.constant 0 : index
    %c0_89 = arith.constant 0 : index
    %c224 = arith.constant 224 : index
    %505 = vector.load %arg6[%c0_88, %c0_89, %c224] : memref<1x8x256xf32, #tpu.memory_space<vmem>>, vector<1x8x32xf32>
    %506 = vector.shape_cast %505 : vector<1x8x32xf32> to vector<8x32xf32>
    %507 = vector.shape_cast %504 : vector<8x32xf32> to vector<1x8x32xf32>
    tpu.vector_store %arg6[%c0_88, %c0_89, %c224], %507 {strides = array<i32>} : memref<1x8x256xf32, #tpu.memory_space<vmem>>, vector<1x8x32xf32>,
    %c0_90 = arith.constant 0 : index
    %c0_91 = arith.constant 0 : index
    %508 = vector.load %arg9[%c0_90, %c0_91] : memref<8x32xf32, #tpu.memory_space<vmem>>, vector<8x32xf32>
    tpu.vector_store %arg9[%c0_90, %c0_91], %471 {strides = array<i32>} : memref<8x32xf32, #tpu.memory_space<vmem>>, vector<8x32xf32>,
    %c0_92 = arith.constant 0 : index
    %c0_93 = arith.constant 0 : index
    %509 = vector.load %arg10[%c0_92, %c0_93] : memref<8x32xf32, #tpu.memory_space<vmem>>, vector<8x32xf32>
    tpu.vector_store %arg10[%c0_92, %c0_93], %474 {strides = array<i32>} : memref<8x32xf32, #tpu.memory_space<vmem>>, vector<8x32xf32>,
    %c0_94 = arith.constant 0 : index
    %c0_95 = arith.constant 0 : index
    %510 = vector.load %arg11[%c0_94, %c0_95] : memref<8x32xf32, #tpu.memory_space<vmem>>, vector<8x32xf32>
    tpu.vector_store %arg11[%c0_94, %c0_95], %497 {strides = array<i32>} : memref<8x32xf32, #tpu.memory_space<vmem>>, vector<8x32xf32>,
    %c0_96 = arith.constant 0 : index
    %c0_97 = arith.constant 0 : index
    %511 = vector.load %arg12[%c0_96, %c0_97] : memref<8x32xf32, #tpu.memory_space<vmem>>, vector<8x32xf32>
    tpu.vector_store %arg12[%c0_96, %c0_97], %500 {strides = array<i32>} : memref<8x32xf32, #tpu.memory_space<vmem>>, vector<8x32xf32>,
    %c0_i32_98 = arith.constant 0 : i32
    %512 = arith.cmpi eq, %arg0, %c0_i32_98 : i32
    %513 = arith.extui %512 : i1 to i32
    %c0_i32_99 = arith.constant 0 : i32
    %514 = arith.cmpi ne, %513, %c0_i32_99 : i32
    scf.if %514 {
      %c0_100 = arith.constant 0 : index
      %c0_101 = arith.constant 0 : index
      %c0_102 = arith.constant 0 : index
      %515 = vector.load %arg7[%c0_100, %c0_101, %c0_102] : memref<2x8x32xf32, #tpu.memory_space<vmem>>, vector<1x8x32xf32>
      %516 = vector.shape_cast %515 : vector<1x8x32xf32> to vector<8x32xf32>
      %517 = vector.shape_cast %471 : vector<8x32xf32> to vector<1x8x32xf32>
      tpu.vector_store %arg7[%c0_100, %c0_101, %c0_102], %517 {strides = array<i32>} : memref<2x8x32xf32, #tpu.memory_space<vmem>>, vector<1x8x32xf32>,
      %c1_103 = arith.constant 1 : index
      %c0_104 = arith.constant 0 : index
      %c0_105 = arith.constant 0 : index
      %518 = vector.load %arg7[%c1_103, %c0_104, %c0_105] : memref<2x8x32xf32, #tpu.memory_space<vmem>>, vector<1x8x32xf32>
      %519 = vector.shape_cast %518 : vector<1x8x32xf32> to vector<8x32xf32>
      %520 = vector.shape_cast %497 : vector<8x32xf32> to vector<1x8x32xf32>
      tpu.vector_store %arg7[%c1_103, %c0_104, %c0_105], %520 {strides = array<i32>} : memref<2x8x32xf32, #tpu.memory_space<vmem>>, vector<1x8x32xf32>,
      %c0_106 = arith.constant 0 : index
      %c0_107 = arith.constant 0 : index
      %c0_108 = arith.constant 0 : index
      %521 = vector.load %arg8[%c0_106, %c0_107, %c0_108] : memref<2x8x32xf32, #tpu.memory_space<vmem>>, vector<1x8x32xf32>
      %522 = vector.shape_cast %521 : vector<1x8x32xf32> to vector<8x32xf32>
      %523 = vector.shape_cast %474 : vector<8x32xf32> to vector<1x8x32xf32>
      tpu.vector_store %arg8[%c0_106, %c0_107, %c0_108], %523 {strides = array<i32>} : memref<2x8x32xf32, #tpu.memory_space<vmem>>, vector<1x8x32xf32>,
      %c1_109 = arith.constant 1 : index
      %c0_110 = arith.constant 0 : index
      %c0_111 = arith.constant 0 : index
      %524 = vector.load %arg8[%c1_109, %c0_110, %c0_111] : memref<2x8x32xf32, #tpu.memory_space<vmem>>, vector<1x8x32xf32>
      %525 = vector.shape_cast %524 : vector<1x8x32xf32> to vector<8x32xf32>
      %526 = vector.shape_cast %500 : vector<8x32xf32> to vector<1x8x32xf32>
      tpu.vector_store %arg8[%c1_109, %c0_110, %c0_111], %526 {strides = array<i32>} : memref<2x8x32xf32, #tpu.memory_space<vmem>>, vector<1x8x32xf32>,
    } else {
    }
    return
  }
  func.func @transform_0(%arg0: i32) -> (i32, i32) {
    %c0_i32 = arith.constant 0 : i32
    %c0_i32_0 = arith.constant 0 : i32
    %c0_i32_1 = arith.constant 0 : i32
    return %c0_i32, %c0_i32_0 : i32, i32
  }
  func.func @transform_1(%arg0: i32) -> (i32, i32, i32) {
    %c0_i32 = arith.constant 0 : i32
    %c0_i32_0 = arith.constant 0 : i32
    %c0_i32_1 = arith.constant 0 : i32
    return %arg0, %c0_i32, %c0_i32_0 : i32, i32, i32
  }
  func.func @transform_2(%arg0: i32) -> (i32, i32) {
    %c0_i32 = arith.constant 0 : i32
    %c0_i32_0 = arith.constant 0 : i32
    %c0_i32_1 = arith.constant 0 : i32
    return %c0_i32, %c0_i32_0 : i32, i32
  }
  func.func @transform_3(%arg0: i32) -> (i32, i32) {
    %c0_i32 = arith.constant 0 : i32
    %c0_i32_0 = arith.constant 0 : i32
    %c0_i32_1 = arith.constant 0 : i32
    return %c0_i32, %c0_i32_0 : i32, i32
  }
  func.func @transform_4(%arg0: i32) -> (i32, i32) {
    %c0_i32 = arith.constant 0 : i32
    %c0_i32_0 = arith.constant 0 : i32
    %c0_i32_1 = arith.constant 0 : i32
    return %c0_i32, %c0_i32_0 : i32, i32
  }
  func.func @transform_5(%arg0: i32) -> (i32, i32, i32) {
    %c0_i32 = arith.constant 0 : i32
    %c0_i32_0 = arith.constant 0 : i32
    %c0_i32_1 = arith.constant 0 : i32
    return %arg0, %c0_i32, %c0_i32_0 : i32, i32, i32
  }
  func.func @transform_6(%arg0: i32) -> (i32, i32, i32) {
    %c0_i32 = arith.constant 0 : i32
    %c0_i32_0 = arith.constant 0 : i32
    %c0_i32_1 = arith.constant 0 : i32
    %c0_i32_2 = arith.constant 0 : i32
    return %c0_i32, %c0_i32_0, %c0_i32_1 : i32, i32, i32
  }
  func.func @transform_7(%arg0: i32) -> (i32, i32, i32) {
    %c0_i32 = arith.constant 0 : i32
    %c0_i32_0 = arith.constant 0 : i32
    %c0_i32_1 = arith.constant 0 : i32
    %c0_i32_2 = arith.constant 0 : i32
    return %c0_i32, %c0_i32_0, %c0_i32_1 : i32, i32, i32
  }
}

</mosaic_0001>

<bundles_post_ra>
// kernel: tpu_custom_call.1
= control target key start
LH: loop header
LB: loop body
LE: loop exit
PB: predicated region body
PF: predicated region fallthrough
CT: control target
= control target key end

     0   :  { %13 = vsyncpa [#allocation7], 0  ;;  %s3532_s0 = inlined_call_operand.vmem [shape: s32[8,1], index: 0, kind: input, shape index: {}]   ;;  %s3533_s1 = inlined_call_operand.hbm [shape: f32[8,8,128], index: 1, kind: input, shape index: {}]   ;;  %s3534_s2 = inlined_call_operand.hbm [shape: f32[32,128], index: 2, kind: input, shape index: {}]   ;;  %s3535_s3 = inlined_call_operand.hbm [shape: f32[64,128], index: 3, kind: input, shape index: {}]   ;;  %s3536_s4 = inlined_call_operand.vmem [shape: f32[1,128], index: 4, kind: input, shape index: {}]   ;;  %s3537_s5 = inlined_call_operand.hbm [shape: f32[1,8,256], index: 5, kind: output, shape index: {0}]   ;;  %s3538_s6 = inlined_call_operand.hbm [shape: f32[2,8,32], index: 6, kind: output, shape index: {1}]   ;;  %s3539_s7 = inlined_call_operand.hbm [shape: f32[2,8,32], index: 7, kind: output, shape index: {2}]  }
   0x1   :  { %14 = vsyncpa [#allocation10], 0 }
   0x2   :  { %15 = vsyncpa [#allocation8], 0 }
   0x3   :  { %16 = vsyncpa [#allocation14], 0  ;;  %s2782_s24 = smov [#allocation9]   ;;  %s2783_s26 = smov [#allocation6]  }
   0x4   :  { %s36_s25 = sshll.u32 %s2782_s24, 4  ;;  %s24_s27 = sshll.u32 %s2783_s26, 4  ;;  %s37_s25 = int_to_ptr.vmem [resolvable:$true] %s36_s25  ;;  %s2837_s27 = int_to_ptr.vmem [resolvable:$true] %s24_s27 }
   0x5   :  { %s2642_s30 = scalar_lea.hbm %s3534_s2, 512 }
   0x6   :  { %p2643_p0 = scmp.ne.s32.totalorder %s3534_s2, %s2642_s30  ;;  %p2646_p1 = scmp.lt.u32.totalorder %s2642_s30, %s3534_s2 }
   0x8   :  { %p2648_p2 = pnand %p2646_p1, %p2643_p0 }
   0xa   :  { %2651 = shalt.err (!%p2648_p2)
}
   0xb   :  { %s2652_s12 = scalar_lea.vmem %s37_s25, 512  ;;  %p2657_p4 = scmp.lt.s32.totalorder %s37_s25, %s37_s25 }
   0xc   :  { %p2653_p3 = scmp.ne.s32.totalorder %s37_s25, %s2652_s12  ;;  %p2658_p5 = scmp.lt.s32.totalorder %s2652_s12, %s2652_s12 }
   0xe   :  { %p2659_p6 = por %p2658_p5, %p2657_p4 }
  0x10   :  { %p2660_p7 = pnand %p2659_p6, %p2653_p3 }
  0x12   :  { %2663 = shalt.err (!%p2660_p7)
}
  0x13   :  { %s2784_s13 = smov 128   ;;  %s2785_s14 = smov 8  }
  0x14   :  { %42 = dma.hbm_to_vmem [thread:$0]  %s3534_s2, 512, %s37_s25, [#allocation10], %s2784_s13, %s2784_s13, %s2785_s14  }
  0x15   :  { %s2664_s19 = scalar_lea.hbm %s3533_s1, 1024 }
  0x16   :  { %p2665_p8 = scmp.ne.s32.totalorder %s3533_s1, %s2664_s19  ;;  %p2668_p9 = scmp.lt.u32.totalorder %s2664_s19, %s3533_s1 }
  0x18   :  { %p2670_p10 = pnand %p2668_p9, %p2665_p8 }
  0x1a   :  { %2673 = shalt.err (!%p2670_p10)
}
  0x1b   :  { %s2674_s24 = scalar_lea.vmem %s2837_s27, 1024  ;;  %p2679_p12 = scmp.lt.s32.totalorder %s2837_s27, %s2837_s27 }
  0x1c   :  { %p2675_p11 = scmp.ne.s32.totalorder %s2837_s27, %s2674_s24  ;;  %p2680_p13 = scmp.lt.s32.totalorder %s2674_s24, %s2674_s24 }
  0x1e   :  { %p2681_p0 = por %p2680_p13, %p2679_p12 }
  0x20   :  { %p2682_p1 = pnand %p2681_p0, %p2675_p11 }
  0x22   :  { %2685 = shalt.err (!%p2682_p1)
}
  0x23   :  { %30 = dma.hbm_to_vmem [thread:$0]  %s3533_s1, 1024, %s2837_s27, [#allocation7], %s2784_s13, %s2784_s13, %s2785_s14  }
  0x24   :  { %s2786_s26 = smov [#allocation11]   ;;  %s2686_s8 = scalar_lea.hbm %s3535_s3, 1024 }
  0x25   :  { %s48_s28 = sshll.u32 %s2786_s26, 4  ;;  %p2687_p2 = scmp.ne.s32.totalorder %s3535_s3, %s2686_s8  ;;  %s49_s28 = int_to_ptr.vmem [resolvable:$true] %s48_s28 }
  0x26   :  { %p2690_p3 = scmp.lt.u32.totalorder %s2686_s8, %s3535_s3 }
  0x28   :  { %p2692_p4 = pnand %p2690_p3, %p2687_p2 }
  0x2a   :  { %2695 = shalt.err (!%p2692_p4)
}
  0x2b   :  { %s2696_s15 = scalar_lea.vmem %s49_s28, 1024  ;;  %p2701_p6 = scmp.lt.s32.totalorder %s49_s28, %s49_s28 }
  0x2c   :  { %p2697_p5 = scmp.ne.s32.totalorder %s49_s28, %s2696_s15  ;;  %p2702_p7 = scmp.lt.s32.totalorder %s2696_s15, %s2696_s15 }
  0x2e   :  { %p2703_p8 = por %p2702_p7, %p2701_p6 }
  0x30   :  { %p2704_p9 = pnand %p2703_p8, %p2697_p5 }
  0x32   :  { %2707 = shalt.err (!%p2704_p9)
}
  0x33   :  { %54 = dma.hbm_to_vmem [thread:$0]  %s3535_s3, 1024, %s49_s28, [#allocation10], %s2784_s13, %s2784_s13, %s2785_s14  }
  0x34   :  { %2774 = dma.done.wait [#allocation7], 1024  }
  0x35   :  { %2775 = vsyncadd [#allocation7], 4294966272 }
  0x36   :  { %2776 = dma.done.wait [#allocation10], 1536  }
  0x37   :  { %2777 = vsyncadd [#allocation10], 4294965760  ;;  %vm70_vm0 = vcmask 261120   ;;  %v2787_v0 = vmov 0.0|0.0   ;;  %vm2788_vm1 = vmmov 0   ;;  %v2789_v1 = vmov 0.0  }
  0x38   :  { %2351 = vmatprep.subr.bf16.mxu1 %v2787_v0  ;;  %2119 = vmatprep.mubr.msk.f32.mxu1 %vm2788_vm1, %v2789_v1  ;;  %71 = vst.msk [vmem:[#allocation2] sm:$0xff] %vm70_vm0, %v2789_v1  ;;  %72 = vst.msk [vmem:[#allocation3] sm:$0xff] %vm70_vm0, %v2789_v1  ;;  %v76_v2 = vld [vmem:[#allocation9] sm:$0xff]  ;;  %v77_v3 = vld [vmem:[#allocation9 + $0x8] sm:$0xff]  ;;  %v2790_v13 = vmov 0   ;;  %s2791_s3 = smov 32  }
  0x39   :  { %73 = vst.msk [vmem:[#allocation4] sm:$0xff] %vm70_vm0, %v2789_v1  ;;  %74 = vst.msk [vmem:[#allocation5] sm:$0xff] %vm70_vm0, %v2789_v1  ;;  %2369 = vmatprep.subr.bf16.mxu0 %v2787_v0  ;;  %2149 = vmatprep.mubr.msk.f32.mxu0 %vm2788_vm1, %v2789_v1  ;;  %v78_v4 = vld [vmem:[#allocation9 + $0x10] sm:$0xff]  ;;  %v2903_v5 = vpack.c.bf16 %v77_v3, %v76_v2  ;;  %v79_v6 = vld [vmem:[#allocation9 + $0x18] sm:$0xff]  ;;  %s2792_s18 = smov 64   ;;  %vm225_vm4 = vcmask 523264  }
  0x3a   :  { %v2906_v7 = vpack.c.bf16 %v79_v6, %v78_v4  ;;  %v96_v9 = vld [vmem:[#allocation6] sm:$0xff]  ;;  %2510 = vset.pattern.permute.xlu1 %v2790_v13  ;;  %2511 = vset.pattern.permute.xlu0 %v2790_v13  ;;  %v81_v30 = vld [vmem:[#allocation11 + $0x8] sm:$0xff]  ;;  %v82_v31 = vld [vmem:[#allocation11 + $0x10] sm:$0xff]  ;;  %s2793_s21 = smov 96   ;;  %s2795_s25 = smov [#allocation12]  }
  0x3b   :  { %2353 = vmatpush3.bf16.msra.mxu1 %v2903_v5  ;;  %2371 = vmatpush3.bf16.msra.mxu0 %v2903_v5  ;;  %v2925_v19 = vld [vmem:[%s3532_s0] sm:$0xff]  ;;  %v83_v33 = vld [vmem:[#allocation11 + $0x18] sm:$0xff]  ;;  %v85_v36 = vld [vmem:[#allocation11 + $0x28] sm:$0xff]  ;;  %s1925_s26 = sshll.u32 %s2795_s25, 4  ;;  %s1926_s26 = int_to_ptr.vmem [resolvable:$true] %s1925_s26 }
  0x3c   :  { %2354 = vmatprep.subr.bf16.mxu1 %v2787_v0  ;;  %2372 = vmatprep.subr.bf16.mxu0 %v2787_v0  ;;  %vm95_vm2 = vcmp.gt.s32.totalorder %v2925_v19, 0  ;;  %v80_v29 = vld [vmem:[#allocation11] sm:$0xff]  ;;  %v2944_v34 = vpack.c.bf16 %v83_v33, %v82_v31  ;;  %v86_v38 = vld [vmem:[#allocation11 + $0x30] sm:$0xff]  ;;  %v87_v39 = vld [vmem:[#allocation11 + $0x38] sm:$0xff]  ;;  %vm340_vm5 = vcmp.gt.s32.totalorder %v2925_v19, 1  ;;  %vm564_vm7 = vcmp.gt.s32.totalorder %v2925_v19, 2 }
  0x3d   :  { %v200_v23 = vsel %vm95_vm2, 1, %v2790_v13  ;;  %v2941_v32 = vpack.c.bf16 %v81_v30, %v80_v29  ;;  %v84_v35 = vld [vmem:[#allocation11 + $0x20] sm:$0xff]  ;;  %v2953_v41 = vpack.c.bf16 %v87_v39, %v86_v38  ;;  %v342_v50 = vld [vmem:[#allocation6 + $0x8] sm:$0xff]  ;;  %vm784_vm9 = vcmp.gt.s32.totalorder %v2925_v19, 3 }
  0x3e   :  { %v2948_v37 = vpack.c.bf16 %v85_v36, %v84_v35  ;;  %v2989_v51 = vld [vmem:[%s3536_s4] ss:$0 sm:$0xff]  ;;  %vm1008_vm11 = vcmp.gt.s32.totalorder %v2925_v19, 4  ;;  %vm1231_vm13 = vcmp.gt.s32.totalorder %v2925_v19, 5  ;;  %vm1454_vm15 = vcmp.gt.s32.totalorder %v2925_v19, 6 }
  0x3f   :  { %2356 = vmatpush3.bf16.msra.mxu1 %v2906_v7  ;;  %v90_v8 = vld [vmem:[#allocation2] sm:$0xff]  ;;  %2374 = vmatpush3.bf16.msra.mxu0 %v2906_v7  ;;  %v91_v15 = vld [vmem:[#allocation3] sm:$0xff] }
  0x40   :  { %2357 = vmatprep.subr.bf16.mxu1 %v2787_v0  ;;  %2375 = vmatprep.subr.bf16.mxu0 %v2787_v0  ;;  %v2936_v28 = vld [vmem:[#allocation4] sm:$0xff]  ;;  %v93_v60 = vld [vmem:[#allocation5] sm:$0xff] }
  0x42   :  { %2120 = vmatmul.mubr.msk.f32.vlgmr.msra.gmra.mrb[0].mxu1 %vm70_vm0, %v90_v8 }
  0x43   :  { %2138 = vmatprep.mubr.msk.f32.mxu1 %vm2788_vm1, %v2789_v1  ;;  %2359 = vmatpush3.bf16.msra.mxu1 %v2941_v32 }
  0x44   :  { %2360 = vmatprep.subr.bf16.mxu1 %v2787_v0 }
  0x47   :  { %2362 = vmatpush3.bf16.msra.mxu1 %v2944_v34 }
  0x48   :  { %2363 = vmatprep.subr.bf16.mxu1 %v2787_v0 }
  0x4b   :  { %2365 = vmatpush3.bf16.msra.mxu1 %v2948_v37 }
  0x4c   :  { %2366 = vmatprep.subr.bf16.mxu1 %v2787_v0 }
  0x4f   :  { %2368 = vmatpush3.bf16.msra.mxu1 %v2953_v41 }
  0x50   :  { %2387 = vmatprep.subr.bf16.mxu1 %v2787_v0 }
 0x115   :  { %v167_v10 = vpop.f32.mrb[0].mxu1 }
 0x116   :  { %v171_v11 = vadd.f32 %v167_v10, %v96_v9  ;;  %v2121_v12 = vpop.f32.mrb[1].mxu1 }
 0x118   :  { %2512 = vtanh.f32 %v171_v11  ;;  %v1967_v16 = vmul.f32 -1.442695, %v171_v11 }
 0x11a   :  { %2514 = vpow2.f32 %v1967_v16 }
 0x122   :  { %v2513_v14 = vpop.eup %2512 }
 0x123   :  { %185 = vrot.lane.b32.xlu0 %v2513_v14, %s2791_s3  ;;  %v440_v14 = vsel %vm340_vm5, 1, %v2790_v13 }
 0x124   :  { %v2515_v17 = vpop.eup %2514 }
 0x125   :  { %v175_v18 = vadd.f32 1.0, %v2515_v17 }
 0x127   :  { %180 = vrot.lane.b32.xlu0 %v91_v15, %s2791_s3  ;;  %2516 = vrcp.f32 %v175_v18 }
 0x131   :  { %v2517_v20 = vpop.eup %2516 }
 0x195   :  { %v186_v21 = vpop.permute.xlu0 %185 }
 0x196   :  { %v188_v22 = vmul.f32 %v2517_v20, %v186_v21 }
 0x198   :  { %190 = vrot.lane.b32.xlu1 %v188_v22, %s2791_s3 }
 0x199   :  { %v2931_v24 = vpop.permute.xlu0 %180 }
 0x19a   :  { %v183_v25 = vmul.f32 %v2517_v20, %v2931_v24 }
 0x19c   :  { %202 = vperm.xlu1 %2510, %v200_v23  }
 0x1a0   :  { %205 = vrot.lane.b32.xlu1 %v90_v8, %s2792_s18 }
 0x1a4   :  { %215 = vrot.lane.b32.xlu1 %v2936_v28, %s2791_s3 }
 0x20a   :  { %v191_v26 = vpop.permute.xlu1 %190 }
 0x20b   :  { %v2934_v27 = vadd.f32 %v191_v26, %v183_v25 }
 0x20d   :  { %2518 = vtanh.f32 %v2934_v27 }
 0x217   :  { %v2519_v40 = vpop.eup %2518 }
 0x218   :  { %196 = vrot.lane.b32.xlu0 %v2519_v40, %s2791_s3  ;;  %v566_v40 = vld [vmem:[#allocation6 + $0x10] sm:$0xff] }
 0x21b   :  { %v2958_v42 = vpop.permute.xlu1 %202 }
 0x21c   :  { %vm204_vm3 = vcmp.eq.s32.totalorder %v2958_v42, 1 }
 0x21d   :  { %v3005_v16 = vsel %vm204_vm3, %v2934_v27, %v2931_v24 }
 0x21f   :  { %v206_v44 = vpop.permute.xlu1 %205 }
 0x223   :  { %v216_v47 = vpop.permute.xlu1 %215 }
 0x28a   :  { %v197_v43 = vpop.permute.xlu0 %196 }
 0x28b   :  { %v199_v45 = vmul.f32 %v2517_v20, %v197_v43 }
 0x28d   :  { %v2963_v46 = vsel %vm204_vm3, %v199_v45, %v206_v44 }
 0x28e   :  { %211 = vrot.lane.b32.xlu0 %v2963_v46, %s2792_s18 }
 0x300   :  { %v212_v48 = vpop.permute.xlu0 %211 }
 0x301   :  { %v218_v49 = vsel %vm70_vm0, %v212_v48, %v216_v47  ;;  %2150 = vmatmul.mubr.msk.f32.vlgmr.msra.gmra.mrb[0].mxu0 %vm70_vm0, %v212_v48 }
 0x302   :  { %2139 = vmatmul.mubr.msk.f32.vlgmr.msra.gmra.mrb[2].mxu1 %vm225_vm4, %v218_v49  ;;  %2377 = vmatpush3.bf16.msra.mxu0 %v2941_v32 }
 0x303   :  { %2378 = vmatprep.subr.bf16.mxu0 %v2787_v0  ;;  %2389 = vmatpush3.bf16.msra.mxu1 %v2903_v5 }
 0x304   :  { %2390 = vmatprep.subr.bf16.mxu1 %v2787_v0  ;;  %2179 = vmatprep.mubr.msk.f32.mxu1 %vm2788_vm1, %v2789_v1 }
 0x305   :  { %2168 = vmatprep.mubr.msk.f32.mxu0 %vm2788_vm1, %v2789_v1 }
 0x306   :  { %2380 = vmatpush3.bf16.msra.mxu0 %v2944_v34 }
 0x307   :  { %2381 = vmatprep.subr.bf16.mxu0 %v2787_v0  ;;  %2392 = vmatpush3.bf16.msra.mxu1 %v2906_v7 }
 0x308   :  { %2393 = vmatprep.subr.bf16.mxu1 %v2787_v0 }
 0x30a   :  { %2383 = vmatpush3.bf16.msra.mxu0 %v2948_v37 }
 0x30b   :  { %2384 = vmatprep.subr.bf16.mxu0 %v2787_v0 }
 0x30e   :  { %2386 = vmatpush3.bf16.msra.mxu0 %v2953_v41 }
 0x30f   :  { %2405 = vmatprep.subr.bf16.mxu0 %v2787_v0 }
 0x3d4   :  { %v411_v52 = vpop.f32.mrb[0].mxu0 }
 0x3d5   :  { %v415_v53 = vadd.f32 %v411_v52, %v342_v50  ;;  %v295_v54 = vpop.f32.mrb[2].mxu1  ;;  %v2151_v55 = vpop.f32.mrb[1].mxu0 }
 0x3d6   :  { %v296_v56 = vadd.f32 %v2989_v51, %v295_v54  ;;  %v2140_v57 = vpop.f32.mrb[3].mxu1 }
 0x3d7   :  { %2520 = vtanh.f32 %v415_v53  ;;  %v1972_v61 = vmul.f32 -1.442695, %v415_v53 }
 0x3d8   :  { %2522 = vtanh.f32 %v296_v56  ;;  %v1970_v62 = vmul.f32 -1.442695, %v296_v56 }
 0x3d9   :  { %2524 = vpow2.f32 %v1972_v61 }
 0x3da   :  { %2526 = vpow2.f32 %v1970_v62 }
 0x3e1   :  { %v2521_v58 = vpop.eup %2520 }
 0x3e2   :  { %v2523_v59 = vpop.eup %2522  ;;  %425 = vrot.lane.b32.xlu1 %v2521_v58, %s2791_s3 }
 0x3e3   :  { %312 = vrot.lane.b32.xlu0 %v2523_v59, %s2791_s3  ;;  %v2525_v63 = vpop.eup %2524 }
 0x3e4   :  { %v2527_v2 = vpop.eup %2526  ;;  %v419_v3 = vadd.f32 1.0, %v2525_v63 }
 0x3e5   :  { %v302_v4 = vadd.f32 1.0, %v2527_v2  ;;  %v664_v2 = vsel %vm564_vm7, 1, %v2790_v13 }
 0x3e6   :  { %2528 = vrcp.f32 %v419_v3 }
 0x3e7   :  { %307 = vrot.lane.b32.xlu0 %v93_v60, %s2791_s3  ;;  %2530 = vrcp.f32 %v302_v4 }
 0x3f0   :  { %v2529_v6 = vpop.eup %2528 }
 0x3f1   :  { %v2531_v9 = vpop.eup %2530  ;;  %v423_v17 = vmul.f32 %v2529_v6, %v3005_v16 }
 0x454   :  { %v426_v8 = vpop.permute.xlu1 %425 }
 0x455   :  { %v428_v10 = vmul.f32 %v2529_v6, %v426_v8  ;;  %v313_v11 = vpop.permute.xlu0 %312 }
 0x456   :  { %v315_v12 = vmul.f32 %v2531_v9, %v313_v11 }
 0x457   :  { %430 = vrot.lane.b32.xlu0 %v428_v10, %s2791_s3 }
 0x458   :  { %317 = vrot.lane.b32.xlu1 %v315_v12, %s2791_s3 }
 0x459   :  { %v2999_v15 = vpop.permute.xlu0 %307 }
 0x45a   :  { %v310_v18 = vmul.f32 %v2531_v9, %v2999_v15 }
 0x45c   :  { %442 = vperm.xlu1 %2510, %v440_v14  }
 0x4c9   :  { %v431_v20 = vpop.permute.xlu0 %430 }
 0x4ca   :  { %v3009_v21 = vadd.f32 %v431_v20, %v423_v17  ;;  %v318_v22 = vpop.permute.xlu1 %317 }
 0x4cb   :  { %v3011_v23 = vadd.f32 %v318_v22, %v310_v18 }
 0x4cc   :  { %2532 = vtanh.f32 %v3009_v21 }
 0x4cd   :  { %2534 = vtanh.f32 %v3011_v23 }
 0x4d6   :  { %v2533_v25 = vpop.eup %2532 }
 0x4d7   :  { %v2535_v26 = vpop.eup %2534  ;;  %436 = vrot.lane.b32.xlu1 %v2533_v25, %s2791_s3 }
 0x4d8   :  { %323 = vrot.lane.b32.xlu0 %v2535_v26, %s2791_s3 }
 0x4db   :  { %v3019_v24 = vpop.permute.xlu1 %442 }
 0x4dc   :  { %327 = vrot.lane.b32.xlu0 %v2936_v28, %s2792_s18  ;;  %vm444_vm6 = vcmp.eq.s32.totalorder %v3019_v24, 1 }
 0x4dd   :  { %v3068_v3 = vsel %vm444_vm6, %v3009_v21, %v3005_v16 }
 0x549   :  { %v437_v27 = vpop.permute.xlu1 %436 }
 0x54a   :  { %v439_v29 = vmul.f32 %v2529_v6, %v437_v27  ;;  %v324_v30 = vpop.permute.xlu0 %323 }
 0x54b   :  { %v3027_v33 = vmul.f32 %v2531_v9, %v324_v30  ;;  %v3077_v9 = vsel %vm204_vm3, %v3011_v23, %v2999_v15 }
 0x54c   :  { %v3025_v31 = vsel %vm444_vm6, %v439_v29, %v2963_v46  ;;  %v786_v29 = vld [vmem:[#allocation6 + $0x18] sm:$0xff] }
 0x54d   :  { %448 = vrot.lane.b32.xlu1 %v3025_v31, %s2792_s18 }
 0x54e   :  { %v328_v35 = vpop.permute.xlu0 %327 }
 0x54f   :  { %v3034_v28 = vsel %vm204_vm3, %v3027_v33, %v328_v35 }
 0x550   :  { %452 = vrot.lane.b32.xlu0 %v3034_v28, %s2793_s21 }
 0x5bf   :  { %v449_v36 = vpop.permute.xlu1 %448 }
 0x5c0   :  { %2180 = vmatmul.mubr.msk.f32.vlgmr.msra.gmra.mrb[4].mxu1 %vm70_vm0, %v449_v36 }
 0x5c1   :  { %2395 = vmatpush3.bf16.msra.mxu1 %v2941_v32  ;;  %2198 = vmatprep.mubr.msk.f32.mxu1 %vm2788_vm1, %v2789_v1 }
 0x5c2   :  { %v453_v38 = vpop.permute.xlu0 %452  ;;  %2396 = vmatprep.subr.bf16.mxu1 %v2787_v0 }
 0x5c3   :  { %v455_v39 = vsel %vm70_vm0, %v449_v36, %v453_v38 }
 0x5c4   :  { %2169 = vmatmul.mubr.msk.f32.vlgmr.msra.gmra.mrb[2].mxu0 %vm225_vm4, %v455_v39 }
 0x5c5   :  { %2407 = vmatpush3.bf16.msra.mxu0 %v2903_v5  ;;  %2398 = vmatpush3.bf16.msra.mxu1 %v2944_v34 }
 0x5c6   :  { %2408 = vmatprep.subr.bf16.mxu0 %v2787_v0  ;;  %2399 = vmatprep.subr.bf16.mxu1 %v2787_v0 }
 0x5c7   :  { %2209 = vmatprep.mubr.msk.f32.mxu0 %vm2788_vm1, %v2789_v1 }
 0x5c9   :  { %2410 = vmatpush3.bf16.msra.mxu0 %v2906_v7  ;;  %2401 = vmatpush3.bf16.msra.mxu1 %v2948_v37 }
 0x5ca   :  { %2402 = vmatprep.subr.bf16.mxu1 %v2787_v0  ;;  %2411 = vmatprep.subr.bf16.mxu0 %v2787_v0 }
 0x5cd   :  { %2404 = vmatpush3.bf16.msra.mxu1 %v2953_v41 }
 0x5ce   :  { %2423 = vmatprep.subr.bf16.mxu1 %v2787_v0 }
 0x693   :  { %v635_v43 = vpop.f32.mrb[4].mxu1 }
 0x694   :  { %v639_v44 = vadd.f32 %v635_v43, %v566_v40  ;;  %v2181_v45 = vpop.f32.mrb[5].mxu1 }
 0x696   :  { %2536 = vtanh.f32 %v639_v44  ;;  %v1976_v52 = vmul.f32 -1.442695, %v639_v44 }
 0x697   :  { %v525_v46 = vpop.f32.mrb[2].mxu0 }
 0x698   :  { %v526_v47 = vadd.f32 %v2989_v51, %v525_v46  ;;  %v2170_v48 = vpop.f32.mrb[3].mxu0 }
 0x69a   :  { %2538 = vtanh.f32 %v526_v47  ;;  %v1974_v53 = vmul.f32 -1.442695, %v526_v47 }
 0x69b   :  { %2540 = vpow2.f32 %v1976_v52 }
 0x69c   :  { %2542 = vpow2.f32 %v1974_v53 }
 0x6a0   :  { %v2537_v49 = vpop.eup %2536 }
 0x6a1   :  { %649 = vrot.lane.b32.xlu0 %v2537_v49, %s2791_s3 }
 0x6a4   :  { %v2539_v50 = vpop.eup %2538 }
 0x6a5   :  { %538 = vrot.lane.b32.xlu1 %v2539_v50, %s2791_s3  ;;  %v2541_v54 = vpop.eup %2540 }
 0x6a6   :  { %v643_v55 = vadd.f32 1.0, %v2541_v54  ;;  %v2543_v56 = vpop.eup %2542 }
 0x6a7   :  { %v532_v57 = vadd.f32 1.0, %v2543_v56  ;;  %v884_v56 = vsel %vm784_vm9, 1, %v2790_v13 }
 0x6a8   :  { %2544 = vrcp.f32 %v643_v55 }
 0x6a9   :  { %2546 = vrcp.f32 %v532_v57 }
 0x6b2   :  { %v2545_v58 = vpop.eup %2544 }
 0x6b3   :  { %v2547_v61 = vpop.eup %2546  ;;  %v647_v4 = vmul.f32 %v2545_v58, %v3068_v3 }
 0x6b4   :  { %v536_v10 = vmul.f32 %v2547_v61, %v3077_v9 }
 0x713   :  { %v650_v59 = vpop.permute.xlu0 %649 }
 0x714   :  { %v652_v60 = vmul.f32 %v2545_v58, %v650_v59 }
 0x716   :  { %654 = vrot.lane.b32.xlu0 %v652_v60, %s2791_s3 }
 0x717   :  { %v539_v62 = vpop.permute.xlu1 %538 }
 0x718   :  { %v541_v63 = vmul.f32 %v2547_v61, %v539_v62 }
 0x71a   :  { %543 = vrot.lane.b32.xlu1 %v541_v63, %s2791_s3 }
 0x71e   :  { %666 = vperm.xlu1 %2510, %v664_v2  }
 0x788   :  { %v655_v6 = vpop.permute.xlu0 %654 }
 0x789   :  { %v3071_v8 = vadd.f32 %v655_v6, %v647_v4 }
 0x78b   :  { %2548 = vtanh.f32 %v3071_v8 }
 0x78c   :  { %v544_v11 = vpop.permute.xlu1 %543 }
 0x78d   :  { %v3081_v12 = vadd.f32 %v544_v11, %v536_v10 }
 0x78f   :  { %2550 = vtanh.f32 %v3081_v12  ;;  %v3136_v57 = vsel %vm444_vm6, %v3081_v12, %v3077_v9 }
 0x795   :  { %v2549_v14 = vpop.eup %2548 }
 0x796   :  { %660 = vrot.lane.b32.xlu1 %v2549_v14, %s2791_s3 }
 0x799   :  { %v2551_v16 = vpop.eup %2550 }
 0x79a   :  { %549 = vrot.lane.b32.xlu0 %v2551_v16, %s2791_s3 }
 0x79d   :  { %v3086_v17 = vpop.permute.xlu1 %666 }
 0x79e   :  { %vm668_vm8 = vcmp.eq.s32.totalorder %v3086_v17, 1 }
 0x79f   :  { %v3143_v59 = vsel %vm668_vm8, %v3071_v8, %v3068_v3 }
 0x808   :  { %v661_v18 = vpop.permute.xlu1 %660 }
 0x809   :  { %v663_v15 = vmul.f32 %v2545_v58, %v661_v18 }
 0x80b   :  { %v3092_v20 = vsel %vm668_vm8, %v663_v15, %v3025_v31 }
 0x80c   :  { %v550_v21 = vpop.permute.xlu0 %549  ;;  %672 = vrot.lane.b32.xlu0 %v3092_v20, %s2792_s18 }
 0x80d   :  { %v3096_v22 = vmul.f32 %v2547_v61, %v550_v21 }
 0x80f   :  { %v3102_v23 = vsel %vm444_vm6, %v3096_v22, %v3034_v28 }
 0x810   :  { %676 = vrot.lane.b32.xlu1 %v3102_v23, %s2793_s21 }
 0x87e   :  { %v673_v25 = vpop.permute.xlu0 %672 }
 0x87f   :  { %2210 = vmatmul.mubr.msk.f32.vlgmr.msra.gmra.mrb[4].mxu0 %vm70_vm0, %v673_v25 }
 0x880   :  { %2413 = vmatpush3.bf16.msra.mxu0 %v2941_v32  ;;  %2228 = vmatprep.mubr.msk.f32.mxu0 %vm2788_vm1, %v2789_v1 }
 0x881   :  { %2414 = vmatprep.subr.bf16.mxu0 %v2787_v0 }
 0x882   :  { %v677_v26 = vpop.permute.xlu1 %676 }
 0x883   :  { %v679_v27 = vsel %vm70_vm0, %v673_v25, %v677_v26 }
 0x884   :  { %2199 = vmatmul.mubr.msk.f32.vlgmr.msra.gmra.mrb[6].mxu1 %vm225_vm4, %v679_v27  ;;  %2416 = vmatpush3.bf16.msra.mxu0 %v2944_v34 }
 0x885   :  { %2417 = vmatprep.subr.bf16.mxu0 %v2787_v0  ;;  %2425 = vmatpush3.bf16.msra.mxu1 %v2903_v5 }
 0x886   :  { %2426 = vmatprep.subr.bf16.mxu1 %v2787_v0  ;;  %2239 = vmatprep.mubr.msk.f32.mxu1 %vm2788_vm1, %v2789_v1 }
 0x888   :  { %2419 = vmatpush3.bf16.msra.mxu0 %v2948_v37 }
 0x889   :  { %2420 = vmatprep.subr.bf16.mxu0 %v2787_v0  ;;  %2428 = vmatpush3.bf16.msra.mxu1 %v2906_v7 }
 0x88a   :  { %2429 = vmatprep.subr.bf16.mxu1 %v2787_v0 }
 0x88c   :  { %2422 = vmatpush3.bf16.msra.mxu0 %v2953_v41 }
 0x88d   :  { %2441 = vmatprep.subr.bf16.mxu0 %v2787_v0 }
 0x952   :  { %v855_v30 = vpop.f32.mrb[4].mxu0 }
 0x953   :  { %v859_v31 = vadd.f32 %v855_v30, %v786_v29  ;;  %v2211_v35 = vpop.f32.mrb[5].mxu0 }
 0x955   :  { %2552 = vtanh.f32 %v859_v31  ;;  %v1980_v43 = vmul.f32 -1.442695, %v859_v31 }
 0x957   :  { %v749_v28 = vpop.f32.mrb[6].mxu1 }
 0x958   :  { %v750_v36 = vadd.f32 %v2989_v51, %v749_v28  ;;  %v2200_v38 = vpop.f32.mrb[7].mxu1 }
 0x95a   :  { %2554 = vtanh.f32 %v750_v36  ;;  %v1978_v44 = vmul.f32 -1.442695, %v750_v36 }
 0x95b   :  { %2556 = vpow2.f32 %v1980_v43 }
 0x95c   :  { %2558 = vpow2.f32 %v1978_v44 }
 0x95f   :  { %v2553_v39 = vpop.eup %2552 }
 0x960   :  { %869 = vrot.lane.b32.xlu1 %v2553_v39, %s2791_s3 }
 0x964   :  { %v2555_v40 = vpop.eup %2554 }
 0x965   :  { %762 = vrot.lane.b32.xlu0 %v2555_v40, %s2791_s3  ;;  %v2557_v45 = vpop.eup %2556 }
 0x966   :  { %v863_v46 = vadd.f32 1.0, %v2557_v45  ;;  %v2559_v47 = vpop.eup %2558 }
 0x967   :  { %v756_v48 = vadd.f32 1.0, %v2559_v47 }
 0x968   :  { %2560 = vrcp.f32 %v863_v46 }
 0x969   :  { %2562 = vrcp.f32 %v756_v48 }
 0x972   :  { %v2561_v49 = vpop.eup %2560 }
 0x973   :  { %v2563_v53 = vpop.eup %2562  ;;  %v867_v62 = vmul.f32 %v2561_v49, %v3143_v59 }
 0x974   :  { %v760_v58 = vmul.f32 %v2563_v53, %v3136_v57 }
 0x9d2   :  { %v870_v50 = vpop.permute.xlu1 %869 }
 0x9d3   :  { %v872_v52 = vmul.f32 %v2561_v49, %v870_v50 }
 0x9d5   :  { %874 = vrot.lane.b32.xlu1 %v872_v52, %s2791_s3 }
 0x9d7   :  { %v763_v54 = vpop.permute.xlu0 %762 }
 0x9d8   :  { %v765_v55 = vmul.f32 %v2563_v53, %v763_v54 }
 0x9da   :  { %767 = vrot.lane.b32.xlu0 %v765_v55, %s2791_s3 }
 0x9de   :  { %886 = vperm.xlu0 %2511, %v884_v56  }
 0xa47   :  { %v875_v60 = vpop.permute.xlu1 %874 }
 0xa48   :  { %v3148_v2 = vadd.f32 %v875_v60, %v867_v62 }
 0xa4c   :  { %v768_v61 = vpop.permute.xlu0 %767 }
 0xa4d   :  { %v3146_v63 = vadd.f32 %v768_v61, %v760_v58 }
 0xa4f   :  { %2564 = vtanh.f32 %v3146_v63 }
 0xa50   :  { %2566 = vtanh.f32 %v3148_v2 }
 0xa59   :  { %v2565_v4 = vpop.eup %2564 }
 0xa5a   :  { %773 = vrot.lane.b32.xlu1 %v2565_v4, %s2791_s3  ;;  %v2567_v6 = vpop.eup %2566 }
 0xa5d   :  { %v3156_v9 = vpop.permute.xlu0 %886 }
 0xa5e   :  { %880 = vrot.lane.b32.xlu1 %v2567_v6, %s2791_s3  ;;  %vm888_vm10 = vcmp.eq.s32.totalorder %v3156_v9, 1 }
 0xa5f   :  { %v3204_v50 = vsel %vm888_vm10, %v3148_v2, %v3143_v59 }
 0xacc   :  { %v774_v3 = vpop.permute.xlu1 %773 }
 0xacd   :  { %v3154_v8 = vmul.f32 %v2563_v53, %v774_v3  ;;  %v3211_v53 = vsel %vm668_vm8, %v3146_v63, %v3136_v57 }
 0xacf   :  { %v3162_v10 = vsel %vm668_vm8, %v3154_v8, %v3102_v23  ;;  %v779_v24 = vsel %vm668_vm8, %v3154_v8, 0.0 }
 0xad0   :  { %896 = vrot.lane.b32.xlu1 %v3162_v10, %s2793_s21  ;;  %v881_v11 = vpop.permute.xlu1 %880 }
 0xad1   :  { %v883_v12 = vmul.f32 %v2561_v49, %v881_v11  ;;  %v1108_v49 = vsel %vm1008_vm11, 1, %v2790_v13 }
 0xad3   :  { %v3170_v14 = vsel %vm888_vm10, %v883_v12, %v3092_v20  ;;  %v1010_v20 = vld [vmem:[#allocation6 + $0x20] sm:$0xff] }
 0xad4   :  { %892 = vrot.lane.b32.xlu0 %v3170_v14, %s2792_s18 }
 0xb42   :  { %v897_v16 = vpop.permute.xlu1 %896 }
 0xb46   :  { %v893_v18 = vpop.permute.xlu0 %892 }
 0xb47   :  { %v899_v15 = vsel %vm70_vm0, %v893_v18, %v897_v16  ;;  %2240 = vmatmul.mubr.msk.f32.vlgmr.msra.gmra.mrb[8].mxu1 %vm70_vm0, %v893_v18 }
 0xb48   :  { %2229 = vmatmul.mubr.msk.f32.vlgmr.msra.gmra.mrb[6].mxu0 %vm225_vm4, %v899_v15  ;;  %2431 = vmatpush3.bf16.msra.mxu1 %v2941_v32 }
 0xb49   :  { %2432 = vmatprep.subr.bf16.mxu1 %v2787_v0  ;;  %2443 = vmatpush3.bf16.msra.mxu0 %v2903_v5 }
 0xb4a   :  { %2444 = vmatprep.subr.bf16.mxu0 %v2787_v0  ;;  %2269 = vmatprep.mubr.msk.f32.mxu0 %vm2788_vm1, %v2789_v1 }
 0xb4b   :  { %2258 = vmatprep.mubr.msk.f32.mxu1 %vm2788_vm1, %v2789_v1 }
 0xb4c   :  { %2434 = vmatpush3.bf16.msra.mxu1 %v2944_v34 }
 0xb4d   :  { %2435 = vmatprep.subr.bf16.mxu1 %v2787_v0  ;;  %2446 = vmatpush3.bf16.msra.mxu0 %v2906_v7 }
 0xb4e   :  { %2447 = vmatprep.subr.bf16.mxu0 %v2787_v0 }
 0xb50   :  { %2437 = vmatpush3.bf16.msra.mxu1 %v2948_v37 }
 0xb51   :  { %2438 = vmatprep.subr.bf16.mxu1 %v2787_v0 }
 0xb54   :  { %2440 = vmatpush3.bf16.msra.mxu1 %v2953_v41 }
 0xb55   :  { %2459 = vmatprep.subr.bf16.mxu1 %v2787_v0 }
 0xc1a   :  { %v1079_v21 = vpop.f32.mrb[8].mxu1 }
 0xc1b   :  { %v1083_v23 = vadd.f32 %v1079_v21, %v1010_v20  ;;  %v969_v25 = vpop.f32.mrb[6].mxu0  ;;  %v2241_v26 = vpop.f32.mrb[9].mxu1 }
 0xc1c   :  { %v970_v27 = vadd.f32 %v2989_v51, %v969_v25  ;;  %v2230_v29 = vpop.f32.mrb[7].mxu0 }
 0xc1d   :  { %2568 = vtanh.f32 %v1083_v23  ;;  %v1984_v35 = vmul.f32 -1.442695, %v1083_v23 }
 0xc1e   :  { %2570 = vtanh.f32 %v970_v27  ;;  %v1982_v28 = vmul.f32 -1.442695, %v970_v27 }
 0xc1f   :  { %2572 = vpow2.f32 %v1984_v35 }
 0xc20   :  { %2574 = vpow2.f32 %v1982_v28 }
 0xc27   :  { %v2569_v30 = vpop.eup %2568 }
 0xc28   :  { %v2571_v31 = vpop.eup %2570  ;;  %1093 = vrot.lane.b32.xlu1 %v2569_v30, %s2791_s3 }
 0xc29   :  { %982 = vrot.lane.b32.xlu0 %v2571_v31, %s2791_s3  ;;  %v2573_v36 = vpop.eup %2572 }
 0xc2a   :  { %v2575_v38 = vpop.eup %2574  ;;  %v1087_v39 = vadd.f32 1.0, %v2573_v36 }
 0xc2b   :  { %v976_v40 = vadd.f32 1.0, %v2575_v38 }
 0xc2c   :  { %2576 = vrcp.f32 %v1087_v39 }
 0xc2d   :  { %2578 = vrcp.f32 %v976_v40 }
 0xc36   :  { %v2577_v43 = vpop.eup %2576 }
 0xc37   :  { %v2579_v45 = vpop.eup %2578  ;;  %v1091_v52 = vmul.f32 %v2577_v43, %v3204_v50 }
 0xc38   :  { %v980_v55 = vmul.f32 %v2579_v45, %v3211_v53 }
 0xc9a   :  { %v1094_v44 = vpop.permute.xlu1 %1093 }
 0xc9b   :  { %v1096_v46 = vmul.f32 %v2577_v43, %v1094_v44  ;;  %v983_v47 = vpop.permute.xlu0 %982 }
 0xc9c   :  { %v985_v48 = vmul.f32 %v2579_v45, %v983_v47 }
 0xc9d   :  { %1098 = vrot.lane.b32.xlu1 %v1096_v46, %s2791_s3 }
 0xc9e   :  { %987 = vrot.lane.b32.xlu0 %v985_v48, %s2791_s3 }
 0xca2   :  { %1110 = vperm.xlu0 %2511, %v1108_v49  }
 0xd0f   :  { %v1099_v54 = vpop.permute.xlu1 %1098 }
 0xd10   :  { %v3214_v56 = vadd.f32 %v1099_v54, %v1091_v52  ;;  %v988_v58 = vpop.permute.xlu0 %987 }
 0xd11   :  { %v3216_v60 = vadd.f32 %v988_v58, %v980_v55 }
 0xd12   :  { %2580 = vtanh.f32 %v3214_v56 }
 0xd13   :  { %2582 = vtanh.f32 %v3216_v60  ;;  %v3281_v52 = vsel %vm888_vm10, %v3216_v60, %v3211_v53 }
 0xd1c   :  { %v2581_v59 = vpop.eup %2580 }
 0xd1d   :  { %v2583_v61 = vpop.eup %2582  ;;  %1104 = vrot.lane.b32.xlu0 %v2581_v59, %s2791_s3 }
 0xd1e   :  { %993 = vrot.lane.b32.xlu1 %v2583_v61, %s2791_s3 }
 0xd21   :  { %v3222_v57 = vpop.permute.xlu0 %1110 }
 0xd22   :  { %vm1112_vm12 = vcmp.eq.s32.totalorder %v3222_v57, 1 }
 0xd23   :  { %v3272_v46 = vsel %vm1112_vm12, %v3214_v56, %v3204_v50 }
 0xd8f   :  { %v1105_v62 = vpop.permute.xlu0 %1104 }
 0xd90   :  { %v1107_v63 = vmul.f32 %v2577_v43, %v1105_v62  ;;  %v994_v2 = vpop.permute.xlu1 %993 }
 0xd91   :  { %v3225_v4 = vmul.f32 %v2579_v45, %v994_v2  ;;  %v1331_v45 = vsel %vm1231_vm13, 1, %v2790_v13 }
 0xd92   :  { %v3230_v6 = vsel %vm1112_vm12, %v1107_v63, %v3170_v14 }
 0xd93   :  { %1116 = vrot.lane.b32.xlu1 %v3230_v6, %s2792_s18  ;;  %v3238_v3 = vsel %vm888_vm10, %v3225_v4, %v3162_v10  ;;  %v1233_v10 = vld [vmem:[#allocation6 + $0x28] sm:$0xff]  ;;  %v999_v17 = vsel %vm888_vm10, %v3225_v4, 0.0 }
 0xd94   :  { %1120 = vrot.lane.b32.xlu0 %v3238_v3, %s2793_s21 }
 0xe05   :  { %v1117_v11 = vpop.permute.xlu1 %1116 }
 0xe06   :  { %2270 = vmatmul.mubr.msk.f32.vlgmr.msra.gmra.mrb[8].mxu0 %vm70_vm0, %v1117_v11  ;;  %v1121_v12 = vpop.permute.xlu0 %1120 }
 0xe07   :  { %v1123_v16 = vsel %vm70_vm0, %v1117_v11, %v1121_v12  ;;  %2449 = vmatpush3.bf16.msra.mxu0 %v2941_v32  ;;  %2288 = vmatprep.mubr.msk.f32.mxu0 %vm2788_vm1, %v2789_v1 }
 0xe08   :  { %2259 = vmatmul.mubr.msk.f32.vlgmr.msra.gmra.mrb[10].mxu1 %vm225_vm4, %v1123_v16  ;;  %2450 = vmatprep.subr.bf16.mxu0 %v2787_v0 }
 0xe09   :  { %2461 = vmatpush3.bf16.msra.mxu1 %v2903_v5  ;;  %2299 = vmatprep.mubr.msk.f32.mxu1 %vm2788_vm1, %v2789_v1 }
 0xe0a   :  { %2462 = vmatprep.subr.bf16.mxu1 %v2787_v0 }
 0xe0b   :  { %2452 = vmatpush3.bf16.msra.mxu0 %v2944_v34 }
 0xe0c   :  { %2453 = vmatprep.subr.bf16.mxu0 %v2787_v0 }
 0xe0d   :  { %2464 = vmatpush3.bf16.msra.mxu1 %v2906_v7 }
 0xe0e   :  { %2465 = vmatprep.subr.bf16.mxu1 %v2787_v0 }
 0xe0f   :  { %2455 = vmatpush3.bf16.msra.mxu0 %v2948_v37 }
 0xe10   :  { %2456 = vmatprep.subr.bf16.mxu0 %v2787_v0 }
 0xe13   :  { %2458 = vmatpush3.bf16.msra.mxu0 %v2953_v41 }
 0xe14   :  { %2477 = vmatprep.subr.bf16.mxu0 %v2787_v0 }
 0xed9   :  { %v1302_v14 = vpop.f32.mrb[8].mxu0 }
 0xeda   :  { %v1306_v18 = vadd.f32 %v1302_v14, %v1233_v10  ;;  %v2271_v15 = vpop.f32.mrb[9].mxu0 }
 0xedb   :  { %v1193_v20 = vpop.f32.mrb[10].mxu1 }
 0xedc   :  { %2584 = vtanh.f32 %v1306_v18  ;;  %v1194_v21 = vadd.f32 %v2989_v51, %v1193_v20  ;;  %v2260_v23 = vpop.f32.mrb[11].mxu1  ;;  %v1988_v27 = vmul.f32 -1.442695, %v1306_v18 }
 0xede   :  { %2586 = vtanh.f32 %v1194_v21  ;;  %v1986_v29 = vmul.f32 -1.442695, %v1194_v21 }
 0xedf   :  { %2588 = vpow2.f32 %v1988_v27 }
 0xee0   :  { %2590 = vpow2.f32 %v1986_v29 }
 0xee6   :  { %v2585_v25 = vpop.eup %2584 }
 0xee7   :  { %1316 = vrot.lane.b32.xlu0 %v2585_v25, %s2791_s3 }
 0xee8   :  { %v2587_v26 = vpop.eup %2586 }
 0xee9   :  { %1206 = vrot.lane.b32.xlu1 %v2587_v26, %s2791_s3  ;;  %v2589_v30 = vpop.eup %2588 }
 0xeea   :  { %v2591_v31 = vpop.eup %2590  ;;  %v1310_v35 = vadd.f32 1.0, %v2589_v30 }
 0xeeb   :  { %v1200_v28 = vadd.f32 1.0, %v2591_v31 }
 0xeec   :  { %2592 = vrcp.f32 %v1310_v35 }
 0xeed   :  { %2594 = vrcp.f32 %v1200_v28 }
 0xef6   :  { %v2593_v36 = vpop.eup %2592 }
 0xef7   :  { %v2595_v40 = vpop.eup %2594  ;;  %v1314_v47 = vmul.f32 %v2593_v36, %v3272_v46 }
 0xef8   :  { %v1204_v54 = vmul.f32 %v2595_v40, %v3281_v52 }
 0xf59   :  { %v1317_v38 = vpop.permute.xlu0 %1316 }
 0xf5a   :  { %v1319_v39 = vmul.f32 %v2593_v36, %v1317_v38 }
 0xf5b   :  { %v1207_v43 = vpop.permute.xlu1 %1206 }
 0xf5c   :  { %1321 = vrot.lane.b32.xlu0 %v1319_v39, %s2791_s3  ;;  %v1209_v44 = vmul.f32 %v2595_v40, %v1207_v43  ;;  %v1554_v39 = vsel %vm1454_vm15, 1, %v2790_v13 }
 0xf5e   :  { %1211 = vrot.lane.b32.xlu1 %v1209_v44, %s2791_s3 }
 0xf62   :  { %1333 = vperm.xlu1 %2510, %v1331_v45  }
 0xfce   :  { %v1322_v48 = vpop.permute.xlu0 %1321 }
 0xfcf   :  { %v3275_v49 = vadd.f32 %v1322_v48, %v1314_v47 }
 0xfd0   :  { %v1212_v55 = vpop.permute.xlu1 %1211 }
 0xfd1   :  { %2596 = vtanh.f32 %v3275_v49  ;;  %v3285_v58 = vadd.f32 %v1212_v55, %v1204_v54 }
 0xfd3   :  { %2598 = vtanh.f32 %v3285_v58  ;;  %v3348_v19 = vsel %vm1112_vm12, %v3285_v58, %v3281_v52 }
 0xfdb   :  { %v2597_v50 = vpop.eup %2596 }
 0xfdc   :  { %1327 = vrot.lane.b32.xlu1 %v2597_v50, %s2791_s3 }
 0xfdd   :  { %v2599_v56 = vpop.eup %2598 }
 0xfde   :  { %1217 = vrot.lane.b32.xlu0 %v2599_v56, %s2791_s3 }
 0xfe1   :  { %v3290_v59 = vpop.permute.xlu1 %1333 }
 0xfe2   :  { %vm1335_vm14 = vcmp.eq.s32.totalorder %v3290_v59, 1 }
0x104e   :  { %v1328_v61 = vpop.permute.xlu1 %1327 }
0x104f   :  { %v1330_v53 = vmul.f32 %v2593_v36, %v1328_v61 }
0x1050   :  { %v1218_v60 = vpop.permute.xlu0 %1217 }
0x1051   :  { %v3296_v62 = vsel %vm1335_vm14, %v1330_v53, %v3230_v6  ;;  %v3298_v63 = vmul.f32 %v2595_v40, %v1218_v60  ;;  %v3339_v40 = vsel %vm1335_vm14, %v3275_v49, %v3272_v46 }
0x1052   :  { %1339 = vrot.lane.b32.xlu0 %v3296_v62, %s2792_s18 }
0x1053   :  { %v3306_v2 = vsel %vm1112_vm12, %v3298_v63, %v3238_v3  ;;  %v1456_v3 = vld [vmem:[#allocation6 + $0x30] sm:$0xff] }
0x1054   :  { %1343 = vrot.lane.b32.xlu1 %v3306_v2, %s2793_s21 }
0x10c4   :  { %v1340_v11 = vpop.permute.xlu0 %1339 }
0x10c5   :  { %2300 = vmatmul.mubr.msk.f32.vlgmr.msra.gmra.mrb[12].mxu1 %vm70_vm0, %v1340_v11 }
0x10c6   :  { %2467 = vmatpush3.bf16.msra.mxu1 %v2941_v32  ;;  %2318 = vmatprep.mubr.msk.f32.mxu1 %vm2788_vm1, %v2789_v1  ;;  %v1344_v6 = vpop.permute.xlu1 %1343 }
0x10c7   :  { %2468 = vmatprep.subr.bf16.mxu1 %v2787_v0  ;;  %v1346_v12 = vsel %vm70_vm0, %v1340_v11, %v1344_v6 }
0x10c8   :  { %2289 = vmatmul.mubr.msk.f32.vlgmr.msra.gmra.mrb[10].mxu0 %vm225_vm4, %v1346_v12 }
0x10c9   :  { %2479 = vmatpush3.bf16.msra.mxu0 %v2903_v5  ;;  %2329 = vmatprep.mubr.msk.f32.mxu0 %vm2788_vm1, %v2789_v1 }
0x10ca   :  { %2470 = vmatpush3.bf16.msra.mxu1 %v2944_v34  ;;  %2480 = vmatprep.subr.bf16.mxu0 %v2787_v0 }
0x10cb   :  { %2471 = vmatprep.subr.bf16.mxu1 %v2787_v0 }
0x10cd   :  { %2482 = vmatpush3.bf16.msra.mxu0 %v2906_v7 }
0x10ce   :  { %2473 = vmatpush3.bf16.msra.mxu1 %v2948_v37  ;;  %2483 = vmatprep.subr.bf16.mxu0 %v2787_v0 }
0x10cf   :  { %2474 = vmatprep.subr.bf16.mxu1 %v2787_v0 }
0x10d2   :  { %2476 = vmatpush3.bf16.msra.mxu1 %v2953_v41 }
0x1198   :  { %v1525_v16 = vpop.f32.mrb[12].mxu1 }
0x1199   :  { %v1529_v5 = vadd.f32 %v1525_v16, %v1456_v3  ;;  %v2301_v10 = vpop.f32.mrb[13].mxu1 }
0x119b   :  { %2600 = vtanh.f32 %v1529_v5  ;;  %v1416_v14 = vpop.f32.mrb[10].mxu0  ;;  %v1992_v21 = vmul.f32 -1.442695, %v1529_v5 }
0x119c   :  { %v1417_v18 = vadd.f32 %v2989_v51, %v1416_v14  ;;  %v2290_v15 = vpop.f32.mrb[11].mxu0 }
0x119e   :  { %2602 = vtanh.f32 %v1417_v18  ;;  %v1990_v23 = vmul.f32 -1.442695, %v1417_v18 }
0x119f   :  { %2604 = vpow2.f32 %v1992_v21 }
0x11a0   :  { %2606 = vpow2.f32 %v1990_v23 }
0x11a5   :  { %v2601_v20 = vpop.eup %2600 }
0x11a6   :  { %1539 = vrot.lane.b32.xlu1 %v2601_v20, %s2791_s3 }
0x11a8   :  { %v2603_v7 = vpop.eup %2602 }
0x11a9   :  { %1429 = vrot.lane.b32.xlu0 %v2603_v7, %s2791_s3  ;;  %v2605_v25 = vpop.eup %2604 }
0x11aa   :  { %v1533_v26 = vadd.f32 1.0, %v2605_v25  ;;  %v2607_v27 = vpop.eup %2606  ;;  %v2640_v25 = vld [vmem:[%s3532_s0] sm:$0xff] }
0x11ab   :  { %v1423_v29 = vadd.f32 1.0, %v2607_v27 }
0x11ac   :  { %2608 = vrcp.f32 %v1533_v26 }
0x11ad   :  { %2610 = vrcp.f32 %v1423_v29 }
0x11b6   :  { %v2609_v30 = vpop.eup %2608 }
0x11b7   :  { %v2611_v28 = vpop.eup %2610  ;;  %v1537_v43 = vmul.f32 %v2609_v30, %v3339_v40 }
0x11b8   :  { %v1427_v47 = vmul.f32 %v2611_v28, %v3348_v19 }
0x1218   :  { %v1540_v31 = vpop.permute.xlu1 %1539 }
0x1219   :  { %v1542_v35 = vmul.f32 %v2609_v30, %v1540_v31 }
0x121b   :  { %1544 = vrot.lane.b32.xlu1 %v1542_v35, %s2791_s3  ;;  %v1430_v36 = vpop.permute.xlu0 %1429 }
0x121c   :  { %v1432_v38 = vmul.f32 %v2611_v28, %v1430_v36 }
0x121e   :  { %1434 = vrot.lane.b32.xlu0 %v1432_v38, %s2791_s3 }
0x1222   :  { %1556 = vperm.xlu0 %2511, %v1554_v39  }
0x128d   :  { %v1545_v44 = vpop.permute.xlu1 %1544 }
0x128e   :  { %v3342_v45 = vadd.f32 %v1545_v44, %v1537_v43 }
0x1290   :  { %2612 = vtanh.f32 %v3342_v45  ;;  %v1435_v48 = vpop.permute.xlu0 %1434 }
0x1291   :  { %v3352_v54 = vadd.f32 %v1435_v48, %v1427_v47 }
0x1293   :  { %2614 = vtanh.f32 %v3352_v54  ;;  %v1445_v35 = vsel %vm1335_vm14, %v3352_v54, %v3348_v19 }
0x129a   :  { %v2613_v46 = vpop.eup %2612 }
0x129b   :  { %1550 = vrot.lane.b32.xlu0 %v2613_v46, %s2791_s3 }
0x129d   :  { %v2615_v49 = vpop.eup %2614 }
0x129e   :  { %1440 = vrot.lane.b32.xlu1 %v2615_v49, %s2791_s3 }
0x12a1   :  { %v3357_v55 = vpop.permute.xlu0 %1556 }
0x12a2   :  { %vm1558_vm2 = vcmp.eq.s32.totalorder %v3357_v55, 1 }
0x12a3   :  { %v3402_v27 = vsel %vm1558_vm2, %v3342_v45, %v3339_v40 }
0x130d   :  { %v1551_v50 = vpop.permute.xlu0 %1550 }
0x130e   :  { %v1553_v52 = vmul.f32 %v2609_v30, %v1551_v50 }
0x1310   :  { %v3363_v58 = vsel %vm1558_vm2, %v1553_v52, %v3296_v62  ;;  %v1441_v56 = vpop.permute.xlu1 %1440  ;;  %v2641_v52 = vld [vmem:[%s3536_s4] ss:$0 sm:$0xff]  ;;  %s2794_s4 = smov [#allocation13]  }
0x1311   :  { %1562 = vrot.lane.b32.xlu1 %v3363_v58, %s2792_s18  ;;  %v3367_v61 = vmul.f32 %v2611_v28, %v1441_v56  ;;  %s1934_s2 = sshll.u32 %s2794_s4, 4  ;;  %s1935_s2 = int_to_ptr.vmem [resolvable:$true] %s1934_s2 }
0x1312   :  { %s2708_s28 = scalar_lea.vmem %s1935_s2, 256  ;;  %p2713_p11 = scmp.lt.s32.totalorder %s1935_s2, %s1935_s2 }
0x1313   :  { %v3373_v53 = vsel %vm1335_vm14, %v3367_v61, %v3306_v2  ;;  %p2709_p10 = scmp.ne.s32.totalorder %s1935_s2, %s2708_s28  ;;  %p2714_p12 = scmp.lt.s32.totalorder %s2708_s28, %s2708_s28 }
0x1314   :  { %1566 = vrot.lane.b32.xlu0 %v3373_v53, %s2793_s21 }
0x1315   :  { %p2715_p13 = por %p2714_p12, %p2713_p11 }
0x1317   :  { %p2716_p0 = pnand %p2715_p13, %p2709_p10 }
0x1383   :  { %v1563_v60 = vpop.permute.xlu1 %1562 }
0x1384   :  { %2330 = vmatmul.mubr.msk.f32.vlgmr.msra.gmra.mrb[12].mxu0 %vm70_vm0, %v1563_v60 }
0x1385   :  { %2485 = vmatpush3.bf16.msra.mxu0 %v2941_v32  ;;  %2348 = vmatprep.mubr.msk.f32.mxu0 %vm2788_vm1, %v2789_v1  ;;  %v1675_v32 = vld [vmem:[#allocation6 + $0x38] sm:$0xff]  ;;  %vm1673_vm1 = vcmp.gt.s32.totalorder %v2640_v25, 7 }
0x1386   :  { %2486 = vmatprep.subr.bf16.mxu0 %v2787_v0  ;;  %v1567_v62 = vpop.permute.xlu0 %1566  ;;  %v1773_v26 = vsel %vm1673_vm1, 1, %v2790_v13 }
0x1387   :  { %v1569_v11 = vsel %vm70_vm0, %v1563_v60, %v1567_v62 }
0x1388   :  { %2319 = vmatmul.mubr.msk.f32.vlgmr.msra.gmra.mrb[14].mxu1 %vm225_vm4, %v1569_v11 }
0x1389   :  { %2488 = vmatpush3.bf16.msra.mxu0 %v2944_v34 }
0x138a   :  { %2489 = vmatprep.subr.bf16.mxu0 %v2787_v0 }
0x138d   :  { %2491 = vmatpush3.bf16.msra.mxu0 %v2948_v37 }
0x138e   :  { %2492 = vmatprep.subr.bf16.mxu0 %v2787_v0 }
0x1391   :  { %2494 = vmatpush3.bf16.msra.mxu0 %v2953_v41 }
0x1457   :  { %v1744_v2 = vpop.f32.mrb[12].mxu0 }
0x1458   :  { %v1748_v1 = vadd.f32 %v1744_v2, %v1675_v32  ;;  %v2331_v6 = vpop.f32.mrb[13].mxu0 }
0x1459   :  { %v332_v6 = vsel %vm204_vm3, %v3027_v33, 0.0  ;;  %vm780_vm3 = vcmask 785920  }
0x145a   :  { %2616 = vtanh.f32 %v1748_v1  ;;  %v1996_v37 = vmul.f32 -1.442695, %v1748_v1 }
0x145b   :  { %v1639_v12 = vpop.f32.mrb[14].mxu1 }
0x145c   :  { %v1640_v3 = vadd.f32 %v2989_v51, %v1639_v12  ;;  %v2320_v16 = vpop.f32.mrb[15].mxu1  ;;  %v555_v12 = vsel %vm444_vm6, %v3096_v22, 0.0  ;;  %v1223_v22 = vsel %vm1112_vm12, %v3298_v63, 0.0  ;;  %vm1004_vm6 = vcmask 1048320  }
0x145e   :  { %2618 = vtanh.f32 %v1640_v3  ;;  %v1994_v0 = vmul.f32 -1.442695, %v1640_v3 }
0x145f   :  { %2620 = vpow2.f32 %v1996_v37 }
0x1460   :  { %2622 = vpow2.f32 %v1994_v0  ;;  %v1446_v0 = vsel %vm1335_vm14, %v3367_v61, 0.0 }
0x1464   :  { %v2617_v5 = vpop.eup %2616 }
0x1465   :  { %1758 = vrot.lane.b32.xlu0 %v2617_v5, %s2791_s3 }
0x1468   :  { %v2619_v34 = vpop.eup %2618 }
0x1469   :  { %1652 = vrot.lane.b32.xlu1 %v2619_v34, %s2791_s3  ;;  %v2621_v41 = vpop.eup %2620 }
0x146a   :  { %v1752_v10 = vadd.f32 1.0, %v2621_v41  ;;  %v2623_v14 = vpop.eup %2622 }
0x146b   :  { %v1646_v18 = vadd.f32 1.0, %v2623_v14 }
0x146c   :  { %2624 = vrcp.f32 %v1752_v10 }
0x146d   :  { %2626 = vrcp.f32 %v1646_v18 }
0x1476   :  { %v2625_v15 = vpop.eup %2624 }
0x1477   :  { %v2627_v7 = vpop.eup %2626  ;;  %v1756_v29 = vmul.f32 %v2625_v15, %v3402_v27 }
0x1478   :  { %v1650_v13 = vmul.f32 %v2627_v7, %v1445_v35 }
0x14d7   :  { %v1759_v51 = vpop.permute.xlu0 %1758 }
0x14d8   :  { %v1761_v20 = vmul.f32 %v2625_v15, %v1759_v51 }
0x14da   :  { %1763 = vrot.lane.b32.xlu0 %v1761_v20, %s2791_s3 }
0x14db   :  { %v1653_v21 = vpop.permute.xlu1 %1652 }
0x14dc   :  { %v1655_v23 = vmul.f32 %v2627_v7, %v1653_v21 }
0x14de   :  { %1657 = vrot.lane.b32.xlu1 %v1655_v23, %s2791_s3 }
0x14e2   :  { %1775 = vperm.xlu1 %2510, %v1773_v26  }
0x154c   :  { %v1764_v30 = vpop.permute.xlu0 %1763 }
0x154d   :  { %v3405_v31 = vadd.f32 %v1764_v30, %v1756_v29 }
0x154f   :  { %2628 = vtanh.f32 %v3405_v31 }
0x1550   :  { %v1658_v28 = vpop.permute.xlu1 %1657 }
0x1551   :  { %v1660_v36 = vadd.f32 %v1658_v28, %v1650_v13 }
0x1553   :  { %2630 = vtanh.f32 %v1660_v36  ;;  %v1668_v3 = vsel %vm1558_vm2, %v1660_v36, %v1445_v35 }
0x1559   :  { %v2629_v38 = vpop.eup %2628 }
0x155a   :  { %1769 = vrot.lane.b32.xlu1 %v2629_v38, %s2791_s3 }
0x155d   :  { %v2631_v39 = vpop.eup %2630 }
0x155e   :  { %1663 = vrot.lane.b32.xlu0 %v2631_v39, %s2791_s3 }
0x1561   :  { %v3414_v40 = vpop.permute.xlu1 %1775 }
0x1562   :  { %vm1777_vm5 = vcmp.eq.s32.totalorder %v3414_v40, 1 }
0x1563   :  { %v1779_v8 = vsel %vm1777_vm5, %v3405_v31, %v3402_v27 }
0x15cc   :  { %v1770_v43 = vpop.permute.xlu1 %1769 }
0x15cd   :  { %v1772_v44 = vmul.f32 %v2625_v15, %v1770_v43 }
0x15cf   :  { %v1778_v45 = vsel %vm1777_vm5, %v1772_v44, %v3363_v58 }
0x15d0   :  { %1781 = vrot.lane.b32.xlu0 %v1778_v45, %s2792_s18  ;;  %v1664_v19 = vpop.permute.xlu0 %1663 }
0x15d1   :  { %v1666_v47 = vmul.f32 %v2627_v7, %v1664_v19 }
0x15d3   :  { %v1667_v48 = vsel %vm1558_vm2, %v1666_v47, %v3373_v53  ;;  %v1669_v41 = vsel %vm1558_vm2, %v1666_v47, 0.0 }
0x15d4   :  { %1785 = vrot.lane.b32.xlu1 %v1667_v48, %s2793_s21 }
0x1642   :  { %v1782_v54 = vpop.permute.xlu0 %1781 }
0x1643   :  { %1894 = vst.msk [vmem:[#allocation2] sm:$0xff] %vm70_vm0, %v1782_v54  ;;  %1913 = vst.msk [vmem:[#allocation13] sm:$0xff] %vm70_vm0, %v1782_v54 }
0x1646   :  { %v1786_v46 = vpop.permute.xlu1 %1785 }
0x1647   :  { %v1788_v49 = vsel %vm70_vm0, %v1782_v54, %v1786_v46 }
0x1648   :  { %2349 = vmatmul.mubr.msk.f32.vlgmr.msra.gmra.mrb[14].mxu0 %vm225_vm4, %v1788_v49  ;;  %vm560_vm4 = vcmask 523520  }
0x171b   :  { %v1858_v50 = vpop.f32.mrb[14].mxu0 }
0x171c   :  { %v1859_v58 = vadd.f32 %v2641_v52, %v1858_v50  ;;  %v2350_v56 = vpop.f32.mrb[15].mxu0 }
0x171e   :  { %2632 = vtanh.f32 %v1859_v58  ;;  %v1998_v60 = vmul.f32 -1.442695, %v1859_v58 }
0x1720   :  { %2634 = vpow2.f32 %v1998_v60 }
0x1728   :  { %v2633_v53 = vpop.eup %2632 }
0x1729   :  { %1871 = vrot.lane.b32.xlu0 %v2633_v53, %s2791_s3 }
0x172a   :  { %v2635_v62 = vpop.eup %2634 }
0x172b   :  { %v1865_v11 = vadd.f32 1.0, %v2635_v62 }
0x172d   :  { %2636 = vrcp.f32 %v1865_v11 }
0x1737   :  { %v2637_v32 = vpop.eup %2636 }
0x1738   :  { %v1869_v16 = vmul.f32 %v2637_v32, %v1668_v3 }
0x179b   :  { %v1872_v2 = vpop.permute.xlu0 %1871 }
0x179c   :  { %v1874_v1 = vmul.f32 %v2637_v32, %v1872_v2 }
0x179e   :  { %1876 = vrot.lane.b32.xlu1 %v1874_v1, %s2791_s3 }
0x17a2   :  { %334 = vrot.lane.b32.xlu1 %v332_v6, %s2792_s18 }
0x17a6   :  { %557 = vrot.lane.b32.xlu1 %v555_v12, %s2793_s21 }
0x1810   :  { %v1877_v5 = vpop.permute.xlu1 %1876 }
0x1811   :  { %v1879_v34 = vadd.f32 %v1877_v5, %v1869_v16 }
0x1813   :  { %2638 = vtanh.f32 %v1879_v34  ;;  %v1887_v10 = vsel %vm1777_vm5, %v1879_v34, %v1668_v3 }
0x1814   :  { %v335_v37 = vpop.permute.xlu1 %334 }
0x1815   :  { %337 = vst.msk [vmem:[#allocation12] sm:$0xff] %vm70_vm0, %v335_v37 }
0x1818   :  { %v558_v42 = vpop.permute.xlu1 %557 }
0x1819   :  { %561 = vst.msk [vmem:[#allocation12] sm:$0xff] %vm560_vm4, %v558_v42 }
0x181a   :  { %781 = vst.msk [vmem:[#allocation12] sm:$0xff] %vm780_vm3, %v779_v24 }
0x181d   :  { %v2639_v33 = vpop.eup %2638 }
0x181e   :  { %1882 = vrot.lane.b32.xlu0 %v2639_v33, %s2791_s3 }
0x1822   :  { %1225 = vrot.lane.b32.xlu0 %v1223_v22, %s2792_s18 }
0x1826   :  { %1448 = vrot.lane.b32.xlu0 %v1446_v0, %s2793_s21 }
0x182a   :  { %1001 = vrot.lane.b32.xlu0 %v999_v17, %s2791_s3 }
0x182e   :  { %1896 = vrot.lane.b32.xlu0 %v1779_v8, %s2793_s21 }
0x1890   :  { %v1883_v57 = vpop.permute.xlu0 %1882 }
0x1891   :  { %v1885_v63 = vmul.f32 %v2637_v32, %v1883_v57 }
0x1893   :  { %v1886_v59 = vsel %vm1777_vm5, %v1885_v63, %v1667_v48  ;;  %v1888_v9 = vsel %vm1777_vm5, %v1885_v63, 0.0 }
0x1894   :  { %1901 = vrot.lane.b32.xlu1 %v1886_v59, %s2792_s18  ;;  %v1226_v61 = vpop.permute.xlu0 %1225 }
0x1895   :  { %1228 = vst.msk [vmem:[#allocation12 + $0x8] sm:$0xff] %vm70_vm0, %v1226_v61 }
0x1898   :  { %1890 = vrot.lane.b32.xlu1 %v1888_v9, %s2791_s3  ;;  %v1449_v4 = vpop.permute.xlu0 %1448 }
0x1899   :  { %1451 = vst.msk [vmem:[#allocation12 + $0x8] sm:$0xff] %vm560_vm4, %v1449_v4 }
0x189a   :  { %1670 = vst.msk [vmem:[#allocation12 + $0x8] sm:$0xff] %vm780_vm3, %v1669_v41 }
0x189c   :  { %1906 = vrot.lane.b32.xlu1 %v1887_v10, %s2793_s21  ;;  %v1002_v14 = vpop.permute.xlu0 %1001 }
0x189d   :  { %1005 = vst.msk [vmem:[#allocation12] sm:$0xff] %vm1004_vm6, %v1002_v14 }
0x18a0   :  { %v1897_v18 = vpop.permute.xlu0 %1896 }
0x18a1   :  { %1899 = vst.msk [vmem:[#allocation3] sm:$0xff] %vm70_vm0, %v1897_v18  ;;  %1916 = vst.msk [vmem:[#allocation15] sm:$0xff] %vm70_vm0, %v1897_v18 }
0x1906   :  { %v1902_v55 = vpop.permute.xlu1 %1901 }
0x1907   :  { %1904 = vst.msk [vmem:[#allocation4] sm:$0xff] %vm70_vm0, %v1902_v55  ;;  %1915 = vst.msk [vmem:[#allocation13 + $0x8] sm:$0xff] %vm70_vm0, %v1902_v55 }
0x1908   :  { %2719 = shalt.err (!%p2716_p0)
}
0x1909   :  { %s2720_s8 = scalar_lea.hbm %s3538_s6, 256 }
0x190a   :  { %p2721_p1 = scmp.ne.s32.totalorder %s3538_s6, %s2720_s8  ;;  %p2724_p2 = scmp.lt.u32.totalorder %s2720_s8, %s3538_s6 }
0x190c   :  { %p2726_p3 = pnand %p2724_p2, %p2721_p1 }
0x190e   :  { %2729 = shalt.err (!%p2726_p3)
}
0x190f   :  { %1940 = dma.vmem_to_hbm [thread:$0]  %s1935_s2, 256, %s3538_s6, [#allocation14], %s2784_s13, %s2784_s13, %s2785_s14   ;;  %v1891_v15 = vpop.permute.xlu1 %1890 }
0x1910   :  { %s2796_s27 = smov [#allocation15]   ;;  %1893 = vst.msk [vmem:[#allocation12 + $0x8] sm:$0xff] %vm1004_vm6, %v1891_v15  ;;  %s2730_s16 = scalar_lea.vmem %s1926_s26, 256 }
0x1911   :  { %s1946_s3 = sshll.u32 %s2796_s27, 4  ;;  %p2731_p4 = scmp.ne.s32.totalorder %s1926_s26, %s2730_s16  ;;  %s1947_s3 = int_to_ptr.vmem [resolvable:$true] %s1946_s3 }
0x1912   :  { %p2735_p5 = scmp.lt.s32.totalorder %s1926_s26, %s1926_s26  ;;  %p2736_p6 = scmp.lt.s32.totalorder %s2730_s16, %s2730_s16 }
0x1914   :  { %p2737_p7 = por %p2736_p6, %p2735_p5 }
0x1916   :  { %p2738_p8 = pnand %p2737_p7, %p2731_p4 }
0x1918   :  { %2741 = shalt.err (!%p2738_p8)
}
0x1919   :  { %s2742_s19 = scalar_lea.hbm %s3537_s5, 256 }
0x191a   :  { %p2743_p9 = scmp.ne.s32.totalorder %s3537_s5, %s2742_s19  ;;  %p2746_p10 = scmp.lt.u32.totalorder %s2742_s19, %s3537_s5 }
0x191c   :  { %p2748_p11 = pnand %p2746_p10, %p2743_p9 }
0x191e   :  { %2751 = shalt.err (!%p2748_p11)
}
0x191f   :  { %1928 = dma.vmem_to_hbm [thread:$0]  %s1926_s26, 256, %s3537_s5, [#allocation8]   ;;  %v1907_v51 = vpop.permute.xlu1 %1906 }
0x1920   :  { %1909 = vst.msk [vmem:[#allocation5] sm:$0xff] %vm70_vm0, %v1907_v51  ;;  %1918 = vst.msk [vmem:[#allocation15 + $0x8] sm:$0xff] %vm70_vm0, %v1907_v51  ;;  %s2752_s24 = scalar_lea.vmem %s1947_s3, 256  ;;  %p2757_p13 = scmp.lt.s32.totalorder %s1947_s3, %s1947_s3 }
0x1921   :  { %p2753_p12 = scmp.ne.s32.totalorder %s1947_s3, %s2752_s24  ;;  %p2758_p0 = scmp.lt.s32.totalorder %s2752_s24, %s2752_s24 }
0x1923   :  { %p2759_p1 = por %p2758_p0, %p2757_p13 }
0x1925   :  { %p2760_p2 = pnand %p2759_p1, %p2753_p12 }
0x1927   :  { %2763 = shalt.err (!%p2760_p2)
}
0x1928   :  { %s2764_s25 = scalar_lea.hbm %s3539_s7, 256 }
0x1929   :  { %p2765_p3 = scmp.ne.s32.totalorder %s3539_s7, %s2764_s25  ;;  %p2768_p4 = scmp.lt.u32.totalorder %s2764_s25, %s3539_s7 }
0x192b   :  { %p2770_p5 = pnand %p2768_p4, %p2765_p3 }
0x192d   :  { %2773 = shalt.err (!%p2770_p5)
}
0x192e   :  { %1952 = dma.vmem_to_hbm [thread:$0]  %s1947_s3, 256, %s3539_s7, [#allocation14], %s2784_s13, %s2784_s13, %s2785_s14  }
0x192f   :  { %2778 = dma.done.wait [#allocation8], 256  }
0x1930   :  { %2779 = vsyncadd [#allocation8], 4294967040 }
0x1931   :  { %2780 = dma.done.wait [#allocation14], 512  }
0x1932   :  { %2781 = vsyncadd [#allocation14], 4294966784 }
0x1933   :  { %1962 = vsyncpa [#allocation7], 1 }
0x1934   :  { %1963 = vsyncpa [#allocation10], 1 }
0x1935   :  { %1964 = vsyncpa [#allocation8], 1 }
0x1936   :  { %1965 = vsyncpa [#allocation14], 1 }

</bundles_post_ra>
